<compile_context>
chip_gen: v5e
topology: v5e:2x2
jax: 0.10.0
libtpu: 0.0.40
codegen_flags: <defaults>
</compile_context>

<pallas_src>
import functools

import jax
import jax.numpy as jnp
from jax.experimental import pallas as pl
from jax.experimental.pallas import tpu as pltpu

HIDDEN = 128      # input_size == hidden_state_size == embedding_dim
FC1 = 256
SUBLANE = 8


def _round_up(n, m):
    return ((n + m - 1) // m) * m


# ----------------- LSTM recurrence (+ fused fc1 epilogue) kernel -----------------
def _lstm_fc1_kernel(T_CHUNK, T_real, xg_ref, whh_ref, fc1w_ref, fc1b_ref,
                     h0_ref, c0_ref, zseq_ref, hout_ref, cout_ref,
                     h_sc, c_sc, hbuf):
    """Processes T_CHUNK timesteps per grid iteration for one batch tile.

    xg_ref  : (T_CHUNK, B_TILE, 4H) f32   precomputed x @ W_ih^T + (b_ih + b_hh)
    whh_ref : (H, 4H)               bf16  W_hh^T
    fc1w_ref: (H, FC1)              bf16  fc1 weight^T (fused epilogue)
    zseq_ref: (T_CHUNK, B_TILE, FC1) f32  per-step fc1 activations (fc2 kernel input)
    """
    i = pl.program_id(1)            # time-chunk index (serial / "arbitrary")

    @pl.when(i == 0)
    def _init():
        h_sc[...] = h0_ref[...]
        c_sc[...] = c0_ref[...]

    H = HIDDEN
    whh = whh_ref[...]              # bf16, resident across the unrolled chunk
    h = h_sc[...]
    c = c_sc[...]

    last_chunk = (T_real - 1) // T_CHUNK
    last_t = (T_real - 1) % T_CHUNK

    # Static (fully unrolled) loop over the chunk; only h @ W_hh^T stays serial.
    for t in range(T_CHUNK):
        gates = xg_ref[t] + jnp.dot(h.astype(jnp.bfloat16), whh,
                                    preferred_element_type=jnp.float32)
        i_g = jax.nn.sigmoid(gates[:, 0 * H:1 * H])
        f_g = jax.nn.sigmoid(gates[:, 1 * H:2 * H])
        g_g = jnp.tanh(gates[:, 2 * H:3 * H])
        o_g = jax.nn.sigmoid(gates[:, 3 * H:4 * H])
        c = f_g * c + i_g * g_g
        h = o_g * jnp.tanh(c)
        hbuf[t] = h                 # stage in VMEM (keeps vreg pressure low)

        if t == last_t:
            # Capture final state at the TRUE last global timestep (T may be padded).
            # hout/cout BlockSpecs are constant across the time axis (resident output).
            @pl.when(i == last_chunk)
            def _capture():
                hout_ref[...] = h
                cout_ref[...] = c

    h_sc[...] = h
    c_sc[...] = c

    # Fused fc1 for the whole chunk in one matmul (off the serial critical path).
    B_TILE = h_sc.shape[0]
    h_all = hbuf[...].reshape(T_CHUNK * B_TILE, H).astype(jnp.bfloat16)
    z = jnp.dot(h_all, fc1w_ref[...],
                preferred_element_type=jnp.float32) + fc1b_ref[...]
    zseq_ref[...] = z.reshape(T_CHUNK, B_TILE, FC1).astype(zseq_ref.dtype)


# -------------------------------- fc2 kernel --------------------------------
def _fc2_kernel(z_ref, w2_ref, b2_ref, out_ref):
    z = z_ref[...].astype(jnp.bfloat16)
    out_ref[...] = (jnp.dot(z, w2_ref[...], preferred_element_type=jnp.float32)
                    + b2_ref[...])


# ---------------------------------- wrapper -----------------------------------
@jax.jit
def model_forward(x, prev_state, params):
    """x: (T, B) int32 token ids. prev_state: (h0, c0) each (1, B, H).

    Returns (logits (T, B, V), (h_n (1, B, H), c_n (1, B, H))).
    """
    h0, c0 = prev_state
    T, B = x.shape
    V = params["fc2_w"].shape[0]

    B_pad = max(SUBLANE, _round_up(B, SUBLANE))
    # v7x: split the recurrence over the 2 TensorCores when the batch is big enough.
    if B_pad >= 2 * SUBLANE:
        B_pad = _round_up(B_pad, 2 * SUBLANE)
        n_btiles = 2
    else:
        n_btiles = 1
    B_TILE = B_pad // n_btiles

    T_CHUNK = min(16, T)
    T_pad = _round_up(T, T_CHUNK)

    # --- glue: embedding gather + hoisted input projection (one big matmul) ---
    embed = jnp.take(params["embedding"], x, axis=0)                  # (T, B, H)
    wih_t = params["w_ih"].T                                          # (H, 4H)
    bias = params["b_ih"] + params["b_hh"]                            # (4H,)
    xgates = embed.reshape(T * B, HIDDEN) @ wih_t + bias              # (T*B, 4H)
    xgates = xgates.reshape(T, B, 4 * HIDDEN)
    # Padded steps / batch rows are pure zeros (no bias) -- never read back.
    xgates = jnp.pad(xgates, ((0, T_pad - T), (0, B_pad - B), (0, 0)))

    whh_t = params["w_hh"].T.astype(jnp.bfloat16)                     # (H, 4H)
    fc1w_t = params["fc1_w"].T.astype(jnp.bfloat16)                   # (H, 256)
    fc1b = params["fc1_b"].reshape(1, FC1).astype(jnp.float32)
    h0_p = jnp.pad(h0[0], ((0, B_pad - B), (0, 0)))                   # (B_pad, H)
    c0_p = jnp.pad(c0[0], ((0, B_pad - B), (0, 0)))

    kern = functools.partial(_lstm_fc1_kernel, T_CHUNK, T)
    z_seq, h_n, c_n = pl.pallas_call(
        kern,
        out_shape=(
            jax.ShapeDtypeStruct((T_pad, B_pad, FC1), jnp.float32),
            jax.ShapeDtypeStruct((B_pad, HIDDEN), jnp.float32),
            jax.ShapeDtypeStruct((B_pad, HIDDEN), jnp.float32),
        ),
        grid_spec=pltpu.PrefetchScalarGridSpec(
            num_scalar_prefetch=0,
            grid=(n_btiles, T_pad // T_CHUNK),
            in_specs=[
                pl.BlockSpec((T_CHUNK, B_TILE, 4 * HIDDEN), lambda b, i: (i, b, 0)),
                pl.BlockSpec((HIDDEN, 4 * HIDDEN), lambda b, i: (0, 0)),   # W_hh^T
                pl.BlockSpec((HIDDEN, FC1), lambda b, i: (0, 0)),          # fc1_w^T
                pl.BlockSpec((1, FC1), lambda b, i: (0, 0)),               # fc1_b
                pl.BlockSpec((B_TILE, HIDDEN), lambda b, i: (b, 0)),       # h0
                pl.BlockSpec((B_TILE, HIDDEN), lambda b, i: (b, 0)),       # c0
            ],
            out_specs=[
                pl.BlockSpec((T_CHUNK, B_TILE, FC1), lambda b, i: (i, b, 0)),
                pl.BlockSpec((B_TILE, HIDDEN), lambda b, i: (b, 0)),       # h_n
                pl.BlockSpec((B_TILE, HIDDEN), lambda b, i: (b, 0)),       # c_n
            ],
            scratch_shapes=[
                pltpu.VMEM((B_TILE, HIDDEN), jnp.float32),                 # h carry
                pltpu.VMEM((B_TILE, HIDDEN), jnp.float32),                 # c carry
                pltpu.VMEM((T_CHUNK, B_TILE, HIDDEN), jnp.float32),        # chunk h's
            ],
        ),
        compiler_params=pltpu.CompilerParams(
            dimension_semantics=("parallel", "arbitrary"),   # batch || , time serial
        ),
    )(xgates, whh_t, fc1w_t, fc1b, h0_p, c0_p)

    # --- fc2 over all T_pad*B_pad rows; vocab OUTER so fc2_w streams from HBM once ---
    R = T_pad * B_pad
    TM = min(256, R)                       # R is always a multiple of 8
    R_pad = _round_up(R, TM)
    z_flat = z_seq.reshape(R, FC1)
    if R_pad > R:
        z_flat = jnp.pad(z_flat, ((0, R_pad - R), (0, 0)))

    TV = min(2048, _round_up(V, 128))      # bf16 weight tile fits v5e scoped VMEM too
    V_pad = _round_up(V, TV)

    fc2w_t = params["fc2_w"].T.astype(jnp.bfloat16)                   # (256, V)
    fc2b = params["fc2_b"].reshape(1, V).astype(jnp.float32)
    if V_pad > V:
        fc2w_t = jnp.pad(fc2w_t, ((0, 0), (0, V_pad - V)))
        fc2b = jnp.pad(fc2b, ((0, 0), (0, V_pad - V)))

    logits_flat = pl.pallas_call(
        _fc2_kernel,
        out_shape=jax.ShapeDtypeStruct((R_pad, V_pad), jnp.float32),
        grid_spec=pltpu.PrefetchScalarGridSpec(
            num_scalar_prefetch=0,
            grid=(V_pad // TV, R_pad // TM),           # vocab OUTER, rows INNER
            in_specs=[
                pl.BlockSpec((TM, FC1), lambda v, r: (r, 0)),
                pl.BlockSpec((FC1, TV), lambda v, r: (0, v)),   # resident across rows
                pl.BlockSpec((1, TV), lambda v, r: (0, v)),
            ],
            out_specs=pl.BlockSpec((TM, TV), lambda v, r: (r, v)),
        ),
        compiler_params=pltpu.CompilerParams(
            dimension_semantics=("parallel", "parallel"),       # shards across v7x TCs
        ),
    )(z_flat, fc2w_t, fc2b)

    logits = logits_flat[:R, :V].reshape(T_pad, B_pad, V)[:T, :B, :]
    return logits, (h_n[:B][None], c_n[:B][None])


# --------------------------------- params / ref --------------------------------
def init_params(key, n_vocab):
    ks = jax.random.split(key, 8)
    s = 0.05
    return {
        "embedding": jax.random.normal(ks[0], (n_vocab, HIDDEN), jnp.float32) * s,
        "w_ih": jax.random.normal(ks[1], (4 * HIDDEN, HIDDEN), jnp.float32) * s,
        "w_hh": jax.random.normal(ks[2], (4 * HIDDEN, HIDDEN), jnp.float32) * s,
        "b_ih": jax.random.normal(ks[3], (4 * HIDDEN,), jnp.float32) * s,
        "b_hh": jax.random.normal(ks[4], (4 * HIDDEN,), jnp.float32) * s,
        "fc1_w": jax.random.normal(ks[5], (FC1, HIDDEN), jnp.float32) * s,
        "fc1_b": jnp.zeros((FC1,), jnp.float32),
        "fc2_w": jax.random.normal(ks[6], (n_vocab, FC1), jnp.float32) * s,
        "fc2_b": jnp.zeros((n_vocab,), jnp.float32),
    }


def reference_forward(x, prev_state, params):
    """Pure-JAX reference replicating PyTorch LSTM semantics (gate order i,f,g,o)."""
    h, c = prev_state[0][0], prev_state[1][0]
    embed = jnp.take(params["embedding"], x, axis=0)
    outs = []
    for t in range(x.shape[0]):
        gates = (embed[t] @ params["w_ih"].T + h @ params["w_hh"].T
                 + params["b_ih"] + params["b_hh"])
        i_g = jax.nn.sigmoid(gates[:, :HIDDEN])
        f_g = jax.nn.sigmoid(gates[:, HIDDEN:2 * HIDDEN])
        g_g = jnp.tanh(gates[:, 2 * HIDDEN:3 * HIDDEN])
        o_g = jax.nn.sigmoid(gates[:, 3 * HIDDEN:])
        c = f_g * c + i_g * g_g
        h = o_g * jnp.tanh(c)
        z = h @ params["fc1_w"].T + params["fc1_b"]
        outs.append(z @ params["fc2_w"].T + params["fc2_b"])
    return jnp.stack(outs), (h[None], c[None])


if __name__ == "__main__":
    key = jax.random.PRNGKey(0)
    n_vocab = 256
    T, B = 8, 2                                    # seq=8, batch=2

    k_p, k_x = jax.random.split(key)
    params = init_params(k_p, n_vocab)
    x = jax.random.randint(k_x, (T, B), 0, n_vocab, dtype=jnp.int32)
    prev_state = (jnp.zeros((1, B, HIDDEN), jnp.float32),
                  jnp.zeros((1, B, HIDDEN), jnp.float32))

    logits, (h_n, c_n) = model_forward(x, prev_state, params)
    jax.block_until_ready((logits, h_n, c_n))

    ref_logits, (ref_h, ref_c) = reference_forward(x, prev_state, params)
    assert logits.shape == (T, B, n_vocab)
    assert h_n.shape == (1, B, HIDDEN) and c_n.shape == (1, B, HIDDEN)
    # bf16 weights in the MXU paths -> tolerances loosened vs. the pure-f32 version.
    assert jnp.allclose(logits, ref_logits, atol=1e-3, rtol=1e-3)
    assert jnp.allclose(h_n, ref_h, atol=1e-3, rtol=1e-3)
    assert jnp.allclose(c_n, ref_c, atol=1e-3, rtol=1e-3)

    print("KERNEL_OK")
</pallas_src>

<mosaic_0001>
module attributes {stable_mosaic.version = 11 : i64} {
  func.func @_fc2_kernel(%arg0: i32, %arg1: i32, %arg2: memref<64x256xf32, #tpu.memory_space<vmem>>, %arg3: memref<256x256xbf16, #tpu.memory_space<vmem>>, %arg4: memref<1x256xf32, #tpu.memory_space<vmem>>, %arg5: memref<64x256xf32, #tpu.memory_space<vmem>>) attributes {dimension_semantics = [#tpu.dimension_semantics<parallel>, #tpu.dimension_semantics<parallel>], iteration_bounds = array<i64: 1, 1>, scalar_prefetch = 0 : i64, scratch_operands = 0 : i64, tpu.core_type = #tpu.core_type<tc>, window_params = [{transform_indices = @transform_0, window_bounds = array<i64: 64, 256>}, {transform_indices = @transform_1, window_bounds = array<i64: 256, 256>}, {transform_indices = @transform_2, window_bounds = array<i64: 1, 256>}, {transform_indices = @transform_3, window_bounds = array<i64: 64, 256>}]} {
    %c0 = arith.constant 0 : index
    %c0_0 = arith.constant 0 : index
    %0 = vector.load %arg2[%c0, %c0_0] : memref<64x256xf32, #tpu.memory_space<vmem>>, vector<64x256xf32>
    %1 = arith.truncf %0 : vector<64x256xf32> to vector<64x256xbf16>
    %c0_1 = arith.constant 0 : index
    %c0_2 = arith.constant 0 : index
    %2 = vector.load %arg3[%c0_1, %c0_2] : memref<256x256xbf16, #tpu.memory_space<vmem>>, vector<256x256xbf16>
    %cst = arith.constant dense<0.000000e+00> : vector<64x256xf32>
    %3 = tpu.matmul %1, %2, %cst {dimension_numbers = #tpu.dot_dimension_numbers<[1], [0], [0], [1], [0, 0, 1, 1], [], []>} : vector<64x256xbf16>, vector<256x256xbf16>, vector<64x256xf32> -> vector<64x256xf32>
    %c0_3 = arith.constant 0 : index
    %c0_4 = arith.constant 0 : index
    %4 = vector.load %arg4[%c0_3, %c0_4] : memref<1x256xf32, #tpu.memory_space<vmem>>, vector<1x256xf32>
    %5 = vector.broadcast %4 : vector<1x256xf32> to vector<64x256xf32>
    %6 = arith.addf %3, %5 : vector<64x256xf32>
    %c0_5 = arith.constant 0 : index
    %c0_6 = arith.constant 0 : index
    %7 = vector.load %arg5[%c0_5, %c0_6] : memref<64x256xf32, #tpu.memory_space<vmem>>, vector<64x256xf32>
    tpu.vector_store %arg5[%c0_5, %c0_6], %6 {strides = array<i32>} : memref<64x256xf32, #tpu.memory_space<vmem>>, vector<64x256xf32>,
    return
  }
  func.func @transform_0(%arg0: i32, %arg1: i32) -> (i32, i32) {
    %c0_i32 = arith.constant 0 : i32
    %c0_i32_0 = arith.constant 0 : i32
    return %arg1, %c0_i32 : i32, i32
  }
  func.func @transform_1(%arg0: i32, %arg1: i32) -> (i32, i32) {
    %c0_i32 = arith.constant 0 : i32
    %c0_i32_0 = arith.constant 0 : i32
    return %c0_i32, %arg0 : i32, i32
  }
  func.func @transform_2(%arg0: i32, %arg1: i32) -> (i32, i32) {
    %c0_i32 = arith.constant 0 : i32
    %c0_i32_0 = arith.constant 0 : i32
    return %c0_i32, %arg0 : i32, i32
  }
  func.func @transform_3(%arg0: i32, %arg1: i32) -> (i32, i32) {
    %c0_i32 = arith.constant 0 : i32
    return %arg1, %arg0 : i32, i32
  }
}

module attributes {stable_mosaic.version = 11 : i64} {
  func.func @_lstm_fc1_kernel(%arg0: i32, %arg1: i32, %arg2: memref<8x8x512xf32, #tpu.memory_space<vmem>>, %arg3: memref<128x512xbf16, #tpu.memory_space<vmem>>, %arg4: memref<128x256xbf16, #tpu.memory_space<vmem>>, %arg5: memref<1x256xf32, #tpu.memory_space<vmem>>, %arg6: memref<8x128xf32, #tpu.memory_space<vmem>>, %arg7: memref<8x128xf32, #tpu.memory_space<vmem>>, %arg8: memref<8x8x256xf32, #tpu.memory_space<vmem>>, %arg9: memref<8x128xf32, #tpu.memory_space<vmem>>, %arg10: memref<8x128xf32, #tpu.memory_space<vmem>>, %arg11: memref<8x128xf32, #tpu.memory_space<vmem>>, %arg12: memref<8x128xf32, #tpu.memory_space<vmem>>, %arg13: memref<8x8x128xf32, #tpu.memory_space<vmem>>) attributes {dimension_semantics = [#tpu.dimension_semantics<parallel>, #tpu.dimension_semantics<arbitrary>], iteration_bounds = array<i64: 1, 1>, scalar_prefetch = 0 : i64, scratch_operands = 3 : i64, tpu.core_type = #tpu.core_type<tc>, window_params = [{transform_indices = @transform_0, window_bounds = array<i64: 8, 8, 512>}, {pipeline_mode = #tpu.pipeline_mode<synchronous>, transform_indices = @transform_1, window_bounds = array<i64: 128, 512>}, {pipeline_mode = #tpu.pipeline_mode<synchronous>, transform_indices = @transform_2, window_bounds = array<i64: 128, 256>}, {pipeline_mode = #tpu.pipeline_mode<synchronous>, transform_indices = @transform_3, window_bounds = array<i64: 1, 256>}, {transform_indices = @transform_4, window_bounds = array<i64: 8, 128>}, {transform_indices = @transform_5, window_bounds = array<i64: 8, 128>}, {transform_indices = @transform_6, window_bounds = array<i64: 8, 8, 256>}, {transform_indices = @transform_7, window_bounds = array<i64: 8, 128>}, {transform_indices = @transform_8, window_bounds = array<i64: 8, 128>}]} {
    %c0_i32 = arith.constant 0 : i32
    %0 = arith.cmpi eq, %arg1, %c0_i32 : i32
    %1 = arith.extui %0 : i1 to i32
    %c0_i32_0 = arith.constant 0 : i32
    %2 = arith.cmpi ne, %1, %c0_i32_0 : i32
    scf.if %2 {
      %c0_95 = arith.constant 0 : index
      %c0_96 = arith.constant 0 : index
      %285 = vector.load %arg6[%c0_95, %c0_96] : memref<8x128xf32, #tpu.memory_space<vmem>>, vector<8x128xf32>
      %c0_97 = arith.constant 0 : index
      %c0_98 = arith.constant 0 : index
      %286 = vector.load %arg11[%c0_97, %c0_98] : memref<8x128xf32, #tpu.memory_space<vmem>>, vector<8x128xf32>
      tpu.vector_store %arg11[%c0_97, %c0_98], %285 {strides = array<i32>} : memref<8x128xf32, #tpu.memory_space<vmem>>, vector<8x128xf32>,
      %c0_99 = arith.constant 0 : index
      %c0_100 = arith.constant 0 : index
      %287 = vector.load %arg7[%c0_99, %c0_100] : memref<8x128xf32, #tpu.memory_space<vmem>>, vector<8x128xf32>
      %c0_101 = arith.constant 0 : index
      %c0_102 = arith.constant 0 : index
      %288 = vector.load %arg12[%c0_101, %c0_102] : memref<8x128xf32, #tpu.memory_space<vmem>>, vector<8x128xf32>
      tpu.vector_store %arg12[%c0_101, %c0_102], %287 {strides = array<i32>} : memref<8x128xf32, #tpu.memory_space<vmem>>, vector<8x128xf32>,
    } else {
    }
    %c0 = arith.constant 0 : index
    %c0_1 = arith.constant 0 : index
    %3 = vector.load %arg3[%c0, %c0_1] : memref<128x512xbf16, #tpu.memory_space<vmem>>, vector<128x512xbf16>
    %c0_2 = arith.constant 0 : index
    %c0_3 = arith.constant 0 : index
    %4 = vector.load %arg11[%c0_2, %c0_3] : memref<8x128xf32, #tpu.memory_space<vmem>>, vector<8x128xf32>
    %c0_4 = arith.constant 0 : index
    %c0_5 = arith.constant 0 : index
    %5 = vector.load %arg12[%c0_4, %c0_5] : memref<8x128xf32, #tpu.memory_space<vmem>>, vector<8x128xf32>
    %c0_6 = arith.constant 0 : index
    %c0_7 = arith.constant 0 : index
    %c0_8 = arith.constant 0 : index
    %6 = vector.load %arg2[%c0_6, %c0_7, %c0_8] : memref<8x8x512xf32, #tpu.memory_space<vmem>>, vector<1x8x512xf32>
    %7 = vector.shape_cast %6 : vector<1x8x512xf32> to vector<8x512xf32>
    %8 = arith.truncf %4 : vector<8x128xf32> to vector<8x128xbf16>
    %cst = arith.constant dense<0.000000e+00> : vector<8x512xf32>
    %9 = tpu.matmul %8, %3, %cst {dimension_numbers = #tpu.dot_dimension_numbers<[1], [0], [0], [1], [0, 0, 1, 1], [], []>} : vector<8x128xbf16>, vector<128x512xbf16>, vector<8x512xf32> -> vector<8x512xf32>
    %10 = arith.addf %7, %9 : vector<8x512xf32>
    %11 = vector.extract_strided_slice %10 {offsets = [0, 0], sizes = [8, 128], strides = [1, 1]} : vector<8x512xf32> to vector<8x128xf32>
    %12 = arith.negf %11 : vector<8x128xf32>
    %13 = math.exp %12 : vector<8x128xf32>
    %cst_9 = arith.constant 1.000000e+00 : f32
    %14 = vector.broadcast %cst_9 : f32 to vector<8x128xf32>
    %15 = arith.addf %14, %13 : vector<8x128xf32>
    %16 = arith.divf %14, %15 : vector<8x128xf32>
    %17 = vector.extract_strided_slice %10 {offsets = [0, 128], sizes = [8, 128], strides = [1, 1]} : vector<8x512xf32> to vector<8x128xf32>
    %18 = arith.negf %17 : vector<8x128xf32>
    %19 = math.exp %18 : vector<8x128xf32>
    %cst_10 = arith.constant 1.000000e+00 : f32
    %20 = vector.broadcast %cst_10 : f32 to vector<8x128xf32>
    %21 = arith.addf %20, %19 : vector<8x128xf32>
    %22 = arith.divf %20, %21 : vector<8x128xf32>
    %23 = vector.extract_strided_slice %10 {offsets = [0, 256], sizes = [8, 128], strides = [1, 1]} : vector<8x512xf32> to vector<8x128xf32>
    %24 = math.tanh %23 : vector<8x128xf32>
    %25 = vector.extract_strided_slice %10 {offsets = [0, 384], sizes = [8, 128], strides = [1, 1]} : vector<8x512xf32> to vector<8x128xf32>
    %26 = arith.negf %25 : vector<8x128xf32>
    %27 = math.exp %26 : vector<8x128xf32>
    %cst_11 = arith.constant 1.000000e+00 : f32
    %28 = vector.broadcast %cst_11 : f32 to vector<8x128xf32>
    %29 = arith.addf %28, %27 : vector<8x128xf32>
    %30 = arith.divf %28, %29 : vector<8x128xf32>
    %31 = arith.mulf %22, %5 : vector<8x128xf32>
    %32 = arith.mulf %16, %24 : vector<8x128xf32>
    %33 = arith.addf %31, %32 : vector<8x128xf32>
    %34 = math.tanh %33 : vector<8x128xf32>
    %35 = arith.mulf %30, %34 : vector<8x128xf32>
    %c0_12 = arith.constant 0 : index
    %c0_13 = arith.constant 0 : index
    %c0_14 = arith.constant 0 : index
    %36 = vector.load %arg13[%c0_12, %c0_13, %c0_14] : memref<8x8x128xf32, #tpu.memory_space<vmem>>, vector<1x8x128xf32>
    %37 = vector.shape_cast %36 : vector<1x8x128xf32> to vector<8x128xf32>
    %38 = vector.shape_cast %35 : vector<8x128xf32> to vector<1x8x128xf32>
    tpu.vector_store %arg13[%c0_12, %c0_13, %c0_14], %38 {strides = array<i32>} : memref<8x8x128xf32, #tpu.memory_space<vmem>>, vector<1x8x128xf32>,
    %c1 = arith.constant 1 : index
    %c0_15 = arith.constant 0 : index
    %c0_16 = arith.constant 0 : index
    %39 = vector.load %arg2[%c1, %c0_15, %c0_16] : memref<8x8x512xf32, #tpu.memory_space<vmem>>, vector<1x8x512xf32>
    %40 = vector.shape_cast %39 : vector<1x8x512xf32> to vector<8x512xf32>
    %41 = arith.truncf %35 : vector<8x128xf32> to vector<8x128xbf16>
    %cst_17 = arith.constant dense<0.000000e+00> : vector<8x512xf32>
    %42 = tpu.matmul %41, %3, %cst_17 {dimension_numbers = #tpu.dot_dimension_numbers<[1], [0], [0], [1], [0, 0, 1, 1], [], []>} : vector<8x128xbf16>, vector<128x512xbf16>, vector<8x512xf32> -> vector<8x512xf32>
    %43 = arith.addf %40, %42 : vector<8x512xf32>
    %44 = vector.extract_strided_slice %43 {offsets = [0, 0], sizes = [8, 128], strides = [1, 1]} : vector<8x512xf32> to vector<8x128xf32>
    %45 = arith.negf %44 : vector<8x128xf32>
    %46 = math.exp %45 : vector<8x128xf32>
    %cst_18 = arith.constant 1.000000e+00 : f32
    %47 = vector.broadcast %cst_18 : f32 to vector<8x128xf32>
    %48 = arith.addf %47, %46 : vector<8x128xf32>
    %49 = arith.divf %47, %48 : vector<8x128xf32>
    %50 = vector.extract_strided_slice %43 {offsets = [0, 128], sizes = [8, 128], strides = [1, 1]} : vector<8x512xf32> to vector<8x128xf32>
    %51 = arith.negf %50 : vector<8x128xf32>
    %52 = math.exp %51 : vector<8x128xf32>
    %cst_19 = arith.constant 1.000000e+00 : f32
    %53 = vector.broadcast %cst_19 : f32 to vector<8x128xf32>
    %54 = arith.addf %53, %52 : vector<8x128xf32>
    %55 = arith.divf %53, %54 : vector<8x128xf32>
    %56 = vector.extract_strided_slice %43 {offsets = [0, 256], sizes = [8, 128], strides = [1, 1]} : vector<8x512xf32> to vector<8x128xf32>
    %57 = math.tanh %56 : vector<8x128xf32>
    %58 = vector.extract_strided_slice %43 {offsets = [0, 384], sizes = [8, 128], strides = [1, 1]} : vector<8x512xf32> to vector<8x128xf32>
    %59 = arith.negf %58 : vector<8x128xf32>
    %60 = math.exp %59 : vector<8x128xf32>
    %cst_20 = arith.constant 1.000000e+00 : f32
    %61 = vector.broadcast %cst_20 : f32 to vector<8x128xf32>
    %62 = arith.addf %61, %60 : vector<8x128xf32>
    %63 = arith.divf %61, %62 : vector<8x128xf32>
    %64 = arith.mulf %55, %33 : vector<8x128xf32>
    %65 = arith.mulf %49, %57 : vector<8x128xf32>
    %66 = arith.addf %64, %65 : vector<8x128xf32>
    %67 = math.tanh %66 : vector<8x128xf32>
    %68 = arith.mulf %63, %67 : vector<8x128xf32>
    %c1_21 = arith.constant 1 : index
    %c0_22 = arith.constant 0 : index
    %c0_23 = arith.constant 0 : index
    %69 = vector.load %arg13[%c1_21, %c0_22, %c0_23] : memref<8x8x128xf32, #tpu.memory_space<vmem>>, vector<1x8x128xf32>
    %70 = vector.shape_cast %69 : vector<1x8x128xf32> to vector<8x128xf32>
    %71 = vector.shape_cast %68 : vector<8x128xf32> to vector<1x8x128xf32>
    tpu.vector_store %arg13[%c1_21, %c0_22, %c0_23], %71 {strides = array<i32>} : memref<8x8x128xf32, #tpu.memory_space<vmem>>, vector<1x8x128xf32>,
    %c2 = arith.constant 2 : index
    %c0_24 = arith.constant 0 : index
    %c0_25 = arith.constant 0 : index
    %72 = vector.load %arg2[%c2, %c0_24, %c0_25] : memref<8x8x512xf32, #tpu.memory_space<vmem>>, vector<1x8x512xf32>
    %73 = vector.shape_cast %72 : vector<1x8x512xf32> to vector<8x512xf32>
    %74 = arith.truncf %68 : vector<8x128xf32> to vector<8x128xbf16>
    %cst_26 = arith.constant dense<0.000000e+00> : vector<8x512xf32>
    %75 = tpu.matmul %74, %3, %cst_26 {dimension_numbers = #tpu.dot_dimension_numbers<[1], [0], [0], [1], [0, 0, 1, 1], [], []>} : vector<8x128xbf16>, vector<128x512xbf16>, vector<8x512xf32> -> vector<8x512xf32>
    %76 = arith.addf %73, %75 : vector<8x512xf32>
    %77 = vector.extract_strided_slice %76 {offsets = [0, 0], sizes = [8, 128], strides = [1, 1]} : vector<8x512xf32> to vector<8x128xf32>
    %78 = arith.negf %77 : vector<8x128xf32>
    %79 = math.exp %78 : vector<8x128xf32>
    %cst_27 = arith.constant 1.000000e+00 : f32
    %80 = vector.broadcast %cst_27 : f32 to vector<8x128xf32>
    %81 = arith.addf %80, %79 : vector<8x128xf32>
    %82 = arith.divf %80, %81 : vector<8x128xf32>
    %83 = vector.extract_strided_slice %76 {offsets = [0, 128], sizes = [8, 128], strides = [1, 1]} : vector<8x512xf32> to vector<8x128xf32>
    %84 = arith.negf %83 : vector<8x128xf32>
    %85 = math.exp %84 : vector<8x128xf32>
    %cst_28 = arith.constant 1.000000e+00 : f32
    %86 = vector.broadcast %cst_28 : f32 to vector<8x128xf32>
    %87 = arith.addf %86, %85 : vector<8x128xf32>
    %88 = arith.divf %86, %87 : vector<8x128xf32>
    %89 = vector.extract_strided_slice %76 {offsets = [0, 256], sizes = [8, 128], strides = [1, 1]} : vector<8x512xf32> to vector<8x128xf32>
    %90 = math.tanh %89 : vector<8x128xf32>
    %91 = vector.extract_strided_slice %76 {offsets = [0, 384], sizes = [8, 128], strides = [1, 1]} : vector<8x512xf32> to vector<8x128xf32>
    %92 = arith.negf %91 : vector<8x128xf32>
    %93 = math.exp %92 : vector<8x128xf32>
    %cst_29 = arith.constant 1.000000e+00 : f32
    %94 = vector.broadcast %cst_29 : f32 to vector<8x128xf32>
    %95 = arith.addf %94, %93 : vector<8x128xf32>
    %96 = arith.divf %94, %95 : vector<8x128xf32>
    %97 = arith.mulf %88, %66 : vector<8x128xf32>
    %98 = arith.mulf %82, %90 : vector<8x128xf32>
    %99 = arith.addf %97, %98 : vector<8x128xf32>
    %100 = math.tanh %99 : vector<8x128xf32>
    %101 = arith.mulf %96, %100 : vector<8x128xf32>
    %c2_30 = arith.constant 2 : index
    %c0_31 = arith.constant 0 : index
    %c0_32 = arith.constant 0 : index
    %102 = vector.load %arg13[%c2_30, %c0_31, %c0_32] : memref<8x8x128xf32, #tpu.memory_space<vmem>>, vector<1x8x128xf32>
    %103 = vector.shape_cast %102 : vector<1x8x128xf32> to vector<8x128xf32>
    %104 = vector.shape_cast %101 : vector<8x128xf32> to vector<1x8x128xf32>
    tpu.vector_store %arg13[%c2_30, %c0_31, %c0_32], %104 {strides = array<i32>} : memref<8x8x128xf32, #tpu.memory_space<vmem>>, vector<1x8x128xf32>,
    %c3 = arith.constant 3 : index
    %c0_33 = arith.constant 0 : index
    %c0_34 = arith.constant 0 : index
    %105 = vector.load %arg2[%c3, %c0_33, %c0_34] : memref<8x8x512xf32, #tpu.memory_space<vmem>>, vector<1x8x512xf32>
    %106 = vector.shape_cast %105 : vector<1x8x512xf32> to vector<8x512xf32>
    %107 = arith.truncf %101 : vector<8x128xf32> to vector<8x128xbf16>
    %cst_35 = arith.constant dense<0.000000e+00> : vector<8x512xf32>
    %108 = tpu.matmul %107, %3, %cst_35 {dimension_numbers = #tpu.dot_dimension_numbers<[1], [0], [0], [1], [0, 0, 1, 1], [], []>} : vector<8x128xbf16>, vector<128x512xbf16>, vector<8x512xf32> -> vector<8x512xf32>
    %109 = arith.addf %106, %108 : vector<8x512xf32>
    %110 = vector.extract_strided_slice %109 {offsets = [0, 0], sizes = [8, 128], strides = [1, 1]} : vector<8x512xf32> to vector<8x128xf32>
    %111 = arith.negf %110 : vector<8x128xf32>
    %112 = math.exp %111 : vector<8x128xf32>
    %cst_36 = arith.constant 1.000000e+00 : f32
    %113 = vector.broadcast %cst_36 : f32 to vector<8x128xf32>
    %114 = arith.addf %113, %112 : vector<8x128xf32>
    %115 = arith.divf %113, %114 : vector<8x128xf32>
    %116 = vector.extract_strided_slice %109 {offsets = [0, 128], sizes = [8, 128], strides = [1, 1]} : vector<8x512xf32> to vector<8x128xf32>
    %117 = arith.negf %116 : vector<8x128xf32>
    %118 = math.exp %117 : vector<8x128xf32>
    %cst_37 = arith.constant 1.000000e+00 : f32
    %119 = vector.broadcast %cst_37 : f32 to vector<8x128xf32>
    %120 = arith.addf %119, %118 : vector<8x128xf32>
    %121 = arith.divf %119, %120 : vector<8x128xf32>
    %122 = vector.extract_strided_slice %109 {offsets = [0, 256], sizes = [8, 128], strides = [1, 1]} : vector<8x512xf32> to vector<8x128xf32>
    %123 = math.tanh %122 : vector<8x128xf32>
    %124 = vector.extract_strided_slice %109 {offsets = [0, 384], sizes = [8, 128], strides = [1, 1]} : vector<8x512xf32> to vector<8x128xf32>
    %125 = arith.negf %124 : vector<8x128xf32>
    %126 = math.exp %125 : vector<8x128xf32>
    %cst_38 = arith.constant 1.000000e+00 : f32
    %127 = vector.broadcast %cst_38 : f32 to vector<8x128xf32>
    %128 = arith.addf %127, %126 : vector<8x128xf32>
    %129 = arith.divf %127, %128 : vector<8x128xf32>
    %130 = arith.mulf %121, %99 : vector<8x128xf32>
    %131 = arith.mulf %115, %123 : vector<8x128xf32>
    %132 = arith.addf %130, %131 : vector<8x128xf32>
    %133 = math.tanh %132 : vector<8x128xf32>
    %134 = arith.mulf %129, %133 : vector<8x128xf32>
    %c3_39 = arith.constant 3 : index
    %c0_40 = arith.constant 0 : index
    %c0_41 = arith.constant 0 : index
    %135 = vector.load %arg13[%c3_39, %c0_40, %c0_41] : memref<8x8x128xf32, #tpu.memory_space<vmem>>, vector<1x8x128xf32>
    %136 = vector.shape_cast %135 : vector<1x8x128xf32> to vector<8x128xf32>
    %137 = vector.shape_cast %134 : vector<8x128xf32> to vector<1x8x128xf32>
    tpu.vector_store %arg13[%c3_39, %c0_40, %c0_41], %137 {strides = array<i32>} : memref<8x8x128xf32, #tpu.memory_space<vmem>>, vector<1x8x128xf32>,
    %c4 = arith.constant 4 : index
    %c0_42 = arith.constant 0 : index
    %c0_43 = arith.constant 0 : index
    %138 = vector.load %arg2[%c4, %c0_42, %c0_43] : memref<8x8x512xf32, #tpu.memory_space<vmem>>, vector<1x8x512xf32>
    %139 = vector.shape_cast %138 : vector<1x8x512xf32> to vector<8x512xf32>
    %140 = arith.truncf %134 : vector<8x128xf32> to vector<8x128xbf16>
    %cst_44 = arith.constant dense<0.000000e+00> : vector<8x512xf32>
    %141 = tpu.matmul %140, %3, %cst_44 {dimension_numbers = #tpu.dot_dimension_numbers<[1], [0], [0], [1], [0, 0, 1, 1], [], []>} : vector<8x128xbf16>, vector<128x512xbf16>, vector<8x512xf32> -> vector<8x512xf32>
    %142 = arith.addf %139, %141 : vector<8x512xf32>
    %143 = vector.extract_strided_slice %142 {offsets = [0, 0], sizes = [8, 128], strides = [1, 1]} : vector<8x512xf32> to vector<8x128xf32>
    %144 = arith.negf %143 : vector<8x128xf32>
    %145 = math.exp %144 : vector<8x128xf32>
    %cst_45 = arith.constant 1.000000e+00 : f32
    %146 = vector.broadcast %cst_45 : f32 to vector<8x128xf32>
    %147 = arith.addf %146, %145 : vector<8x128xf32>
    %148 = arith.divf %146, %147 : vector<8x128xf32>
    %149 = vector.extract_strided_slice %142 {offsets = [0, 128], sizes = [8, 128], strides = [1, 1]} : vector<8x512xf32> to vector<8x128xf32>
    %150 = arith.negf %149 : vector<8x128xf32>
    %151 = math.exp %150 : vector<8x128xf32>
    %cst_46 = arith.constant 1.000000e+00 : f32
    %152 = vector.broadcast %cst_46 : f32 to vector<8x128xf32>
    %153 = arith.addf %152, %151 : vector<8x128xf32>
    %154 = arith.divf %152, %153 : vector<8x128xf32>
    %155 = vector.extract_strided_slice %142 {offsets = [0, 256], sizes = [8, 128], strides = [1, 1]} : vector<8x512xf32> to vector<8x128xf32>
    %156 = math.tanh %155 : vector<8x128xf32>
    %157 = vector.extract_strided_slice %142 {offsets = [0, 384], sizes = [8, 128], strides = [1, 1]} : vector<8x512xf32> to vector<8x128xf32>
    %158 = arith.negf %157 : vector<8x128xf32>
    %159 = math.exp %158 : vector<8x128xf32>
    %cst_47 = arith.constant 1.000000e+00 : f32
    %160 = vector.broadcast %cst_47 : f32 to vector<8x128xf32>
    %161 = arith.addf %160, %159 : vector<8x128xf32>
    %162 = arith.divf %160, %161 : vector<8x128xf32>
    %163 = arith.mulf %154, %132 : vector<8x128xf32>
    %164 = arith.mulf %148, %156 : vector<8x128xf32>
    %165 = arith.addf %163, %164 : vector<8x128xf32>
    %166 = math.tanh %165 : vector<8x128xf32>
    %167 = arith.mulf %162, %166 : vector<8x128xf32>
    %c4_48 = arith.constant 4 : index
    %c0_49 = arith.constant 0 : index
    %c0_50 = arith.constant 0 : index
    %168 = vector.load %arg13[%c4_48, %c0_49, %c0_50] : memref<8x8x128xf32, #tpu.memory_space<vmem>>, vector<1x8x128xf32>
    %169 = vector.shape_cast %168 : vector<1x8x128xf32> to vector<8x128xf32>
    %170 = vector.shape_cast %167 : vector<8x128xf32> to vector<1x8x128xf32>
    tpu.vector_store %arg13[%c4_48, %c0_49, %c0_50], %170 {strides = array<i32>} : memref<8x8x128xf32, #tpu.memory_space<vmem>>, vector<1x8x128xf32>,
    %c5 = arith.constant 5 : index
    %c0_51 = arith.constant 0 : index
    %c0_52 = arith.constant 0 : index
    %171 = vector.load %arg2[%c5, %c0_51, %c0_52] : memref<8x8x512xf32, #tpu.memory_space<vmem>>, vector<1x8x512xf32>
    %172 = vector.shape_cast %171 : vector<1x8x512xf32> to vector<8x512xf32>
    %173 = arith.truncf %167 : vector<8x128xf32> to vector<8x128xbf16>
    %cst_53 = arith.constant dense<0.000000e+00> : vector<8x512xf32>
    %174 = tpu.matmul %173, %3, %cst_53 {dimension_numbers = #tpu.dot_dimension_numbers<[1], [0], [0], [1], [0, 0, 1, 1], [], []>} : vector<8x128xbf16>, vector<128x512xbf16>, vector<8x512xf32> -> vector<8x512xf32>
    %175 = arith.addf %172, %174 : vector<8x512xf32>
    %176 = vector.extract_strided_slice %175 {offsets = [0, 0], sizes = [8, 128], strides = [1, 1]} : vector<8x512xf32> to vector<8x128xf32>
    %177 = arith.negf %176 : vector<8x128xf32>
    %178 = math.exp %177 : vector<8x128xf32>
    %cst_54 = arith.constant 1.000000e+00 : f32
    %179 = vector.broadcast %cst_54 : f32 to vector<8x128xf32>
    %180 = arith.addf %179, %178 : vector<8x128xf32>
    %181 = arith.divf %179, %180 : vector<8x128xf32>
    %182 = vector.extract_strided_slice %175 {offsets = [0, 128], sizes = [8, 128], strides = [1, 1]} : vector<8x512xf32> to vector<8x128xf32>
    %183 = arith.negf %182 : vector<8x128xf32>
    %184 = math.exp %183 : vector<8x128xf32>
    %cst_55 = arith.constant 1.000000e+00 : f32
    %185 = vector.broadcast %cst_55 : f32 to vector<8x128xf32>
    %186 = arith.addf %185, %184 : vector<8x128xf32>
    %187 = arith.divf %185, %186 : vector<8x128xf32>
    %188 = vector.extract_strided_slice %175 {offsets = [0, 256], sizes = [8, 128], strides = [1, 1]} : vector<8x512xf32> to vector<8x128xf32>
    %189 = math.tanh %188 : vector<8x128xf32>
    %190 = vector.extract_strided_slice %175 {offsets = [0, 384], sizes = [8, 128], strides = [1, 1]} : vector<8x512xf32> to vector<8x128xf32>
    %191 = arith.negf %190 : vector<8x128xf32>
    %192 = math.exp %191 : vector<8x128xf32>
    %cst_56 = arith.constant 1.000000e+00 : f32
    %193 = vector.broadcast %cst_56 : f32 to vector<8x128xf32>
    %194 = arith.addf %193, %192 : vector<8x128xf32>
    %195 = arith.divf %193, %194 : vector<8x128xf32>
    %196 = arith.mulf %187, %165 : vector<8x128xf32>
    %197 = arith.mulf %181, %189 : vector<8x128xf32>
    %198 = arith.addf %196, %197 : vector<8x128xf32>
    %199 = math.tanh %198 : vector<8x128xf32>
    %200 = arith.mulf %195, %199 : vector<8x128xf32>
    %c5_57 = arith.constant 5 : index
    %c0_58 = arith.constant 0 : index
    %c0_59 = arith.constant 0 : index
    %201 = vector.load %arg13[%c5_57, %c0_58, %c0_59] : memref<8x8x128xf32, #tpu.memory_space<vmem>>, vector<1x8x128xf32>
    %202 = vector.shape_cast %201 : vector<1x8x128xf32> to vector<8x128xf32>
    %203 = vector.shape_cast %200 : vector<8x128xf32> to vector<1x8x128xf32>
    tpu.vector_store %arg13[%c5_57, %c0_58, %c0_59], %203 {strides = array<i32>} : memref<8x8x128xf32, #tpu.memory_space<vmem>>, vector<1x8x128xf32>,
    %c6 = arith.constant 6 : index
    %c0_60 = arith.constant 0 : index
    %c0_61 = arith.constant 0 : index
    %204 = vector.load %arg2[%c6, %c0_60, %c0_61] : memref<8x8x512xf32, #tpu.memory_space<vmem>>, vector<1x8x512xf32>
    %205 = vector.shape_cast %204 : vector<1x8x512xf32> to vector<8x512xf32>
    %206 = arith.truncf %200 : vector<8x128xf32> to vector<8x128xbf16>
    %cst_62 = arith.constant dense<0.000000e+00> : vector<8x512xf32>
    %207 = tpu.matmul %206, %3, %cst_62 {dimension_numbers = #tpu.dot_dimension_numbers<[1], [0], [0], [1], [0, 0, 1, 1], [], []>} : vector<8x128xbf16>, vector<128x512xbf16>, vector<8x512xf32> -> vector<8x512xf32>
    %208 = arith.addf %205, %207 : vector<8x512xf32>
    %209 = vector.extract_strided_slice %208 {offsets = [0, 0], sizes = [8, 128], strides = [1, 1]} : vector<8x512xf32> to vector<8x128xf32>
    %210 = arith.negf %209 : vector<8x128xf32>
    %211 = math.exp %210 : vector<8x128xf32>
    %cst_63 = arith.constant 1.000000e+00 : f32
    %212 = vector.broadcast %cst_63 : f32 to vector<8x128xf32>
    %213 = arith.addf %212, %211 : vector<8x128xf32>
    %214 = arith.divf %212, %213 : vector<8x128xf32>
    %215 = vector.extract_strided_slice %208 {offsets = [0, 128], sizes = [8, 128], strides = [1, 1]} : vector<8x512xf32> to vector<8x128xf32>
    %216 = arith.negf %215 : vector<8x128xf32>
    %217 = math.exp %216 : vector<8x128xf32>
    %cst_64 = arith.constant 1.000000e+00 : f32
    %218 = vector.broadcast %cst_64 : f32 to vector<8x128xf32>
    %219 = arith.addf %218, %217 : vector<8x128xf32>
    %220 = arith.divf %218, %219 : vector<8x128xf32>
    %221 = vector.extract_strided_slice %208 {offsets = [0, 256], sizes = [8, 128], strides = [1, 1]} : vector<8x512xf32> to vector<8x128xf32>
    %222 = math.tanh %221 : vector<8x128xf32>
    %223 = vector.extract_strided_slice %208 {offsets = [0, 384], sizes = [8, 128], strides = [1, 1]} : vector<8x512xf32> to vector<8x128xf32>
    %224 = arith.negf %223 : vector<8x128xf32>
    %225 = math.exp %224 : vector<8x128xf32>
    %cst_65 = arith.constant 1.000000e+00 : f32
    %226 = vector.broadcast %cst_65 : f32 to vector<8x128xf32>
    %227 = arith.addf %226, %225 : vector<8x128xf32>
    %228 = arith.divf %226, %227 : vector<8x128xf32>
    %229 = arith.mulf %220, %198 : vector<8x128xf32>
    %230 = arith.mulf %214, %222 : vector<8x128xf32>
    %231 = arith.addf %229, %230 : vector<8x128xf32>
    %232 = math.tanh %231 : vector<8x128xf32>
    %233 = arith.mulf %228, %232 : vector<8x128xf32>
    %c6_66 = arith.constant 6 : index
    %c0_67 = arith.constant 0 : index
    %c0_68 = arith.constant 0 : index
    %234 = vector.load %arg13[%c6_66, %c0_67, %c0_68] : memref<8x8x128xf32, #tpu.memory_space<vmem>>, vector<1x8x128xf32>
    %235 = vector.shape_cast %234 : vector<1x8x128xf32> to vector<8x128xf32>
    %236 = vector.shape_cast %233 : vector<8x128xf32> to vector<1x8x128xf32>
    tpu.vector_store %arg13[%c6_66, %c0_67, %c0_68], %236 {strides = array<i32>} : memref<8x8x128xf32, #tpu.memory_space<vmem>>, vector<1x8x128xf32>,
    %c7 = arith.constant 7 : index
    %c0_69 = arith.constant 0 : index
    %c0_70 = arith.constant 0 : index
    %237 = vector.load %arg2[%c7, %c0_69, %c0_70] : memref<8x8x512xf32, #tpu.memory_space<vmem>>, vector<1x8x512xf32>
    %238 = vector.shape_cast %237 : vector<1x8x512xf32> to vector<8x512xf32>
    %239 = arith.truncf %233 : vector<8x128xf32> to vector<8x128xbf16>
    %cst_71 = arith.constant dense<0.000000e+00> : vector<8x512xf32>
    %240 = tpu.matmul %239, %3, %cst_71 {dimension_numbers = #tpu.dot_dimension_numbers<[1], [0], [0], [1], [0, 0, 1, 1], [], []>} : vector<8x128xbf16>, vector<128x512xbf16>, vector<8x512xf32> -> vector<8x512xf32>
    %241 = arith.addf %238, %240 : vector<8x512xf32>
    %242 = vector.extract_strided_slice %241 {offsets = [0, 0], sizes = [8, 128], strides = [1, 1]} : vector<8x512xf32> to vector<8x128xf32>
    %243 = arith.negf %242 : vector<8x128xf32>
    %244 = math.exp %243 : vector<8x128xf32>
    %cst_72 = arith.constant 1.000000e+00 : f32
    %245 = vector.broadcast %cst_72 : f32 to vector<8x128xf32>
    %246 = arith.addf %245, %244 : vector<8x128xf32>
    %247 = arith.divf %245, %246 : vector<8x128xf32>
    %248 = vector.extract_strided_slice %241 {offsets = [0, 128], sizes = [8, 128], strides = [1, 1]} : vector<8x512xf32> to vector<8x128xf32>
    %249 = arith.negf %248 : vector<8x128xf32>
    %250 = math.exp %249 : vector<8x128xf32>
    %cst_73 = arith.constant 1.000000e+00 : f32
    %251 = vector.broadcast %cst_73 : f32 to vector<8x128xf32>
    %252 = arith.addf %251, %250 : vector<8x128xf32>
    %253 = arith.divf %251, %252 : vector<8x128xf32>
    %254 = vector.extract_strided_slice %241 {offsets = [0, 256], sizes = [8, 128], strides = [1, 1]} : vector<8x512xf32> to vector<8x128xf32>
    %255 = math.tanh %254 : vector<8x128xf32>
    %256 = vector.extract_strided_slice %241 {offsets = [0, 384], sizes = [8, 128], strides = [1, 1]} : vector<8x512xf32> to vector<8x128xf32>
    %257 = arith.negf %256 : vector<8x128xf32>
    %258 = math.exp %257 : vector<8x128xf32>
    %cst_74 = arith.constant 1.000000e+00 : f32
    %259 = vector.broadcast %cst_74 : f32 to vector<8x128xf32>
    %260 = arith.addf %259, %258 : vector<8x128xf32>
    %261 = arith.divf %259, %260 : vector<8x128xf32>
    %262 = arith.mulf %253, %231 : vector<8x128xf32>
    %263 = arith.mulf %247, %255 : vector<8x128xf32>
    %264 = arith.addf %262, %263 : vector<8x128xf32>
    %265 = math.tanh %264 : vector<8x128xf32>
    %266 = arith.mulf %261, %265 : vector<8x128xf32>
    %c7_75 = arith.constant 7 : index
    %c0_76 = arith.constant 0 : index
    %c0_77 = arith.constant 0 : index
    %267 = vector.load %arg13[%c7_75, %c0_76, %c0_77] : memref<8x8x128xf32, #tpu.memory_space<vmem>>, vector<1x8x128xf32>
    %268 = vector.shape_cast %267 : vector<1x8x128xf32> to vector<8x128xf32>
    %269 = vector.shape_cast %266 : vector<8x128xf32> to vector<1x8x128xf32>
    tpu.vector_store %arg13[%c7_75, %c0_76, %c0_77], %269 {strides = array<i32>} : memref<8x8x128xf32, #tpu.memory_space<vmem>>, vector<1x8x128xf32>,
    %c0_i32_78 = arith.constant 0 : i32
    %270 = arith.cmpi eq, %arg1, %c0_i32_78 : i32
    %271 = arith.extui %270 : i1 to i32
    %c0_i32_79 = arith.constant 0 : i32
    %272 = arith.cmpi ne, %271, %c0_i32_79 : i32
    scf.if %272 {
      %c0_95 = arith.constant 0 : index
      %c0_96 = arith.constant 0 : index
      %285 = vector.load %arg9[%c0_95, %c0_96] : memref<8x128xf32, #tpu.memory_space<vmem>>, vector<8x128xf32>
      tpu.vector_store %arg9[%c0_95, %c0_96], %266 {strides = array<i32>} : memref<8x128xf32, #tpu.memory_space<vmem>>, vector<8x128xf32>,
      %c0_97 = arith.constant 0 : index
      %c0_98 = arith.constant 0 : index
      %286 = vector.load %arg10[%c0_97, %c0_98] : memref<8x128xf32, #tpu.memory_space<vmem>>, vector<8x128xf32>
      tpu.vector_store %arg10[%c0_97, %c0_98], %264 {strides = array<i32>} : memref<8x128xf32, #tpu.memory_space<vmem>>, vector<8x128xf32>,
    } else {
    }
    %c0_80 = arith.constant 0 : index
    %c0_81 = arith.constant 0 : index
    %273 = vector.load %arg11[%c0_80, %c0_81] : memref<8x128xf32, #tpu.memory_space<vmem>>, vector<8x128xf32>
    tpu.vector_store %arg11[%c0_80, %c0_81], %266 {strides = array<i32>} : memref<8x128xf32, #tpu.memory_space<vmem>>, vector<8x128xf32>,
    %c0_82 = arith.constant 0 : index
    %c0_83 = arith.constant 0 : index
    %274 = vector.load %arg12[%c0_82, %c0_83] : memref<8x128xf32, #tpu.memory_space<vmem>>, vector<8x128xf32>
    tpu.vector_store %arg12[%c0_82, %c0_83], %264 {strides = array<i32>} : memref<8x128xf32, #tpu.memory_space<vmem>>, vector<8x128xf32>,
    %c0_84 = arith.constant 0 : index
    %c0_85 = arith.constant 0 : index
    %c0_86 = arith.constant 0 : index
    %275 = vector.load %arg13[%c0_84, %c0_85, %c0_86] : memref<8x8x128xf32, #tpu.memory_space<vmem>>, vector<8x8x128xf32>
    %276 = vector.shape_cast %275 : vector<8x8x128xf32> to vector<64x128xf32>
    %277 = arith.truncf %276 : vector<64x128xf32> to vector<64x128xbf16>
    %c0_87 = arith.constant 0 : index
    %c0_88 = arith.constant 0 : index
    %278 = vector.load %arg4[%c0_87, %c0_88] : memref<128x256xbf16, #tpu.memory_space<vmem>>, vector<128x256xbf16>
    %cst_89 = arith.constant dense<0.000000e+00> : vector<64x256xf32>
    %279 = tpu.matmul %277, %278, %cst_89 {dimension_numbers = #tpu.dot_dimension_numbers<[1], [0], [0], [1], [0, 0, 1, 1], [], []>} : vector<64x128xbf16>, vector<128x256xbf16>, vector<64x256xf32> -> vector<64x256xf32>
    %c0_90 = arith.constant 0 : index
    %c0_91 = arith.constant 0 : index
    %280 = vector.load %arg5[%c0_90, %c0_91] : memref<1x256xf32, #tpu.memory_space<vmem>>, vector<1x256xf32>
    %281 = vector.broadcast %280 : vector<1x256xf32> to vector<64x256xf32>
    %282 = arith.addf %279, %281 : vector<64x256xf32>
    %283 = vector.shape_cast %282 : vector<64x256xf32> to vector<8x8x256xf32>
    %c0_92 = arith.constant 0 : index
    %c0_93 = arith.constant 0 : index
    %c0_94 = arith.constant 0 : index
    %284 = vector.load %arg8[%c0_92, %c0_93, %c0_94] : memref<8x8x256xf32, #tpu.memory_space<vmem>>, vector<8x8x256xf32>
    tpu.vector_store %arg8[%c0_92, %c0_93, %c0_94], %283 {strides = array<i32>} : memref<8x8x256xf32, #tpu.memory_space<vmem>>, vector<8x8x256xf32>,
    return
  }
  func.func @transform_0(%arg0: i32, %arg1: i32) -> (i32, i32, i32) {
    %c0_i32 = arith.constant 0 : i32
    %c0_i32_0 = arith.constant 0 : i32
    return %arg1, %arg0, %c0_i32 : i32, i32, i32
  }
  func.func @transform_1(%arg0: i32, %arg1: i32) -> (i32, i32) {
    %c0_i32 = arith.constant 0 : i32
    %c0_i32_0 = arith.constant 0 : i32
    %c0_i32_1 = arith.constant 0 : i32
    return %c0_i32, %c0_i32_0 : i32, i32
  }
  func.func @transform_2(%arg0: i32, %arg1: i32) -> (i32, i32) {
    %c0_i32 = arith.constant 0 : i32
    %c0_i32_0 = arith.constant 0 : i32
    %c0_i32_1 = arith.constant 0 : i32
    return %c0_i32, %c0_i32_0 : i32, i32
  }
  func.func @transform_3(%arg0: i32, %arg1: i32) -> (i32, i32) {
    %c0_i32 = arith.constant 0 : i32
    %c0_i32_0 = arith.constant 0 : i32
    %c0_i32_1 = arith.constant 0 : i32
    return %c0_i32, %c0_i32_0 : i32, i32
  }
  func.func @transform_4(%arg0: i32, %arg1: i32) -> (i32, i32) {
    %c0_i32 = arith.constant 0 : i32
    %c0_i32_0 = arith.constant 0 : i32
    return %arg0, %c0_i32 : i32, i32
  }
  func.func @transform_5(%arg0: i32, %arg1: i32) -> (i32, i32) {
    %c0_i32 = arith.constant 0 : i32
    %c0_i32_0 = arith.constant 0 : i32
    return %arg0, %c0_i32 : i32, i32
  }
  func.func @transform_6(%arg0: i32, %arg1: i32) -> (i32, i32, i32) {
    %c0_i32 = arith.constant 0 : i32
    %c0_i32_0 = arith.constant 0 : i32
    return %arg1, %arg0, %c0_i32 : i32, i32, i32
  }
  func.func @transform_7(%arg0: i32, %arg1: i32) -> (i32, i32) {
    %c0_i32 = arith.constant 0 : i32
    %c0_i32_0 = arith.constant 0 : i32
    return %arg0, %c0_i32 : i32, i32
  }
  func.func @transform_8(%arg0: i32, %arg1: i32) -> (i32, i32) {
    %c0_i32 = arith.constant 0 : i32
    %c0_i32_0 = arith.constant 0 : i32
    return %arg0, %c0_i32 : i32, i32
  }
}

</mosaic_0001>

<bundles_post_ra>
// kernel: model_forward.3
= control target key start
LH: loop header
LB: loop body
LE: loop exit
PB: predicated region body
PF: predicated region fallthrough
CT: control target
= control target key end

     0   :  { %s863_s1 = inlined_call_operand.vmem [shape: bf16[256,256], index: 1, kind: input, shape index: {}]   ;;  %s864_s0 = inlined_call_operand.vmem [shape: f32[64,256], index: 0, kind: input, shape index: {}]   ;;  %s865_s2 = inlined_call_operand.vmem [shape: f32[1,256], index: 2, kind: input, shape index: {}]   ;;  %s866_s3 = inlined_call_operand.vmem [shape: f32[64,256], index: 3, kind: output, shape index: {}]  }
   0x1   :  { %v430_v0 = vld [vmem:[%s863_s1 + $0x70] sm:$0xf]  ;;  %v515_v1 = vld [vmem:[%s863_s1 + $0x74] sm:$0xf0]  ;;  %v514_v5 = vld [vmem:[%s863_s1 + $0x74] sm:$0xf] }
   0x2   :  { %v494_v2 = vld [vmem:[%s863_s1 + $0xf0] sm:$0xf]  ;;  %v431_v3 = vor.u32 %v515_v1, %v430_v0  ;;  %v531_v4 = vld [vmem:[%s863_s1 + $0xf4] sm:$0xf0]  ;;  %v432_v6 = vld [vmem:[%s863_s1 + $0x78] sm:$0xf0] }
   0x3   :  { %v495_v7 = vor.u32 %v531_v4, %v494_v2  ;;  %v435_v8 = vor.u32 %v514_v5, %v432_v6  ;;  %v530_v9 = vld [vmem:[%s863_s1 + $0xf4] sm:$0xf]  ;;  %v496_v10 = vld [vmem:[%s863_s1 + $0xf8] sm:$0xf0]  ;;  %v422_v11 = vld [vmem:[%s863_s1 + $0x60] sm:$0xf] }
   0x4   :  { %236 = vmatpush.bf16.msra.mxu0 %v431_v3  ;;  %v499_v12 = vor.u32 %v530_v9, %v496_v10  ;;  %v513_v13 = vld [vmem:[%s863_s1 + $0x64] sm:$0xf0]  ;;  %v486_v14 = vld [vmem:[%s863_s1 + $0xe0] sm:$0xf]  ;;  %v512_v18 = vld [vmem:[%s863_s1 + $0x64] sm:$0xf] }
   0x5   :  { %v529_v15 = vld [vmem:[%s863_s1 + $0xe4] sm:$0xf0]  ;;  %265 = vmatpush.bf16.msra.mxu1 %v495_v7  ;;  %294 = vmatpush.bf16.msra.mxu2 %v435_v8  ;;  %v423_v16 = vor.u32 %v513_v13, %v422_v11  ;;  %v424_v19 = vld [vmem:[%s863_s1 + $0x68] sm:$0xf0]  ;;  %v528_v20 = vld [vmem:[%s863_s1 + $0xe4] sm:$0xf] }
   0x6   :  { %v487_v17 = vor.u32 %v529_v15, %v486_v14  ;;  %323 = vmatpush.bf16.msra.mxu3 %v499_v12  ;;  %v427_v21 = vor.u32 %v512_v18, %v424_v19  ;;  %v488_v22 = vld [vmem:[%s863_s1 + $0xe8] sm:$0xf0]  ;;  %v414_v23 = vld [vmem:[%s863_s1 + $0x50] sm:$0xf]  ;;  %v511_v24 = vld [vmem:[%s863_s1 + $0x54] sm:$0xf0] }
   0x7   :  { %v491_v25 = vor.u32 %v528_v20, %v488_v22  ;;  %v478_v26 = vld [vmem:[%s863_s1 + $0xd0] sm:$0xf]  ;;  %v527_v27 = vld [vmem:[%s863_s1 + $0xd4] sm:$0xf0]  ;;  %v510_v28 = vld [vmem:[%s863_s1 + $0x54] sm:$0xf]  ;;  %v415_v29 = vor.u32 %v511_v24, %v414_v23 }
   0x8   :  { %237 = vmatpush.bf16.msra.mxu0 %v423_v16  ;;  %v416_v30 = vld [vmem:[%s863_s1 + $0x58] sm:$0xf0]  ;;  %v526_v31 = vld [vmem:[%s863_s1 + $0xd4] sm:$0xf]  ;;  %v479_v33 = vor.u32 %v527_v27, %v478_v26  ;;  %v406_v35 = vld [vmem:[%s863_s1 + $0x40] sm:$0xf] }
   0x9   :  { %v480_v32 = vld [vmem:[%s863_s1 + $0xd8] sm:$0xf0]  ;;  %266 = vmatpush.bf16.msra.mxu1 %v487_v17  ;;  %295 = vmatpush.bf16.msra.mxu2 %v427_v21  ;;  %v419_v34 = vor.u32 %v510_v28, %v416_v30  ;;  %v509_v36 = vld [vmem:[%s863_s1 + $0x44] sm:$0xf0]  ;;  %v470_v37 = vld [vmem:[%s863_s1 + $0xc0] sm:$0xf] }
   0xa   :  { %324 = vmatpush.bf16.msra.mxu3 %v491_v25  ;;  %v483_v38 = vor.u32 %v526_v31, %v480_v32  ;;  %v525_v39 = vld [vmem:[%s863_s1 + $0xc4] sm:$0xf0]  ;;  %v508_v40 = vld [vmem:[%s863_s1 + $0x44] sm:$0xf]  ;;  %v408_v41 = vld [vmem:[%s863_s1 + $0x48] sm:$0xf0]  ;;  %v407_v44 = vor.u32 %v509_v36, %v406_v35 }
   0xb   :  { %v524_v42 = vld [vmem:[%s863_s1 + $0xc4] sm:$0xf]  ;;  %v472_v43 = vld [vmem:[%s863_s1 + $0xc8] sm:$0xf0]  ;;  %v471_v45 = vor.u32 %v525_v39, %v470_v37  ;;  %v411_v46 = vor.u32 %v508_v40, %v408_v41  ;;  %v398_v47 = vld [vmem:[%s863_s1 + $0x30] sm:$0xf] }
   0xc   :  { %238 = vmatpush.bf16.msra.mxu0 %v415_v29  ;;  %v507_v48 = vld [vmem:[%s863_s1 + $0x34] sm:$0xf0]  ;;  %v462_v49 = vld [vmem:[%s863_s1 + $0xb0] sm:$0xf]  ;;  %v475_v50 = vor.u32 %v524_v42, %v472_v43  ;;  %v506_v52 = vld [vmem:[%s863_s1 + $0x34] sm:$0xf] }
   0xd   :  { %267 = vmatpush.bf16.msra.mxu1 %v479_v33  ;;  %296 = vmatpush.bf16.msra.mxu2 %v419_v34  ;;  %v523_v51 = vld [vmem:[%s863_s1 + $0xb4] sm:$0xf0]  ;;  %v400_v53 = vld [vmem:[%s863_s1 + $0x38] sm:$0xf0]  ;;  %v522_v54 = vld [vmem:[%s863_s1 + $0xb4] sm:$0xf]  ;;  %v399_v56 = vor.u32 %v507_v48, %v398_v47 }
   0xe   :  { %325 = vmatpush.bf16.msra.mxu3 %v483_v38  ;;  %v464_v55 = vld [vmem:[%s863_s1 + $0xb8] sm:$0xf0]  ;;  %v463_v57 = vor.u32 %v523_v51, %v462_v49  ;;  %v403_v58 = vor.u32 %v506_v52, %v400_v53  ;;  %v390_v59 = vld [vmem:[%s863_s1 + $0x20] sm:$0xf]  ;;  %v505_v60 = vld [vmem:[%s863_s1 + $0x24] sm:$0xf0] }
   0xf   :  { %v454_v61 = vld [vmem:[%s863_s1 + $0xa0] sm:$0xf]  ;;  %v467_v62 = vor.u32 %v522_v54, %v464_v55  ;;  %v521_v63 = vld [vmem:[%s863_s1 + $0xa4] sm:$0xf0]  ;;  %v504_v0 = vld [vmem:[%s863_s1 + $0x24] sm:$0xf]  ;;  %v391_v4 = vor.u32 %v505_v60, %v390_v59 }
  0x10   :  { %239 = vmatpush.bf16.msra.mxu0 %v407_v44  ;;  %v392_v1 = vld [vmem:[%s863_s1 + $0x28] sm:$0xf0]  ;;  %v520_v2 = vld [vmem:[%s863_s1 + $0xa4] sm:$0xf]  ;;  %v455_v5 = vor.u32 %v521_v63, %v454_v61  ;;  %v382_v7 = vld [vmem:[%s863_s1 + $0x10] sm:$0xf] }
  0x11   :  { %268 = vmatpush.bf16.msra.mxu1 %v471_v45  ;;  %297 = vmatpush.bf16.msra.mxu2 %v411_v46  ;;  %v456_v3 = vld [vmem:[%s863_s1 + $0xa8] sm:$0xf0]  ;;  %v395_v6 = vor.u32 %v504_v0, %v392_v1  ;;  %v503_v8 = vld [vmem:[%s863_s1 + $0x14] sm:$0xf0]  ;;  %v446_v9 = vld [vmem:[%s863_s1 + $0x90] sm:$0xf] }
  0x12   :  { %326 = vmatpush.bf16.msra.mxu3 %v475_v50  ;;  %v459_v10 = vor.u32 %v520_v2, %v456_v3  ;;  %v519_v11 = vld [vmem:[%s863_s1 + $0x94] sm:$0xf0]  ;;  %v502_v12 = vld [vmem:[%s863_s1 + $0x14] sm:$0xf]  ;;  %v384_v13 = vld [vmem:[%s863_s1 + $0x18] sm:$0xf0]  ;;  %v383_v16 = vor.u32 %v503_v8, %v382_v7 }
  0x13   :  { %v518_v14 = vld [vmem:[%s863_s1 + $0x94] sm:$0xf]  ;;  %v448_v15 = vld [vmem:[%s863_s1 + $0x98] sm:$0xf0]  ;;  %v447_v17 = vor.u32 %v519_v11, %v446_v9  ;;  %v387_v18 = vor.u32 %v502_v12, %v384_v13  ;;  %v374_v19 = vld [vmem:[%s863_s1] sm:$0xf] }
  0x14   :  { %240 = vmatpush.bf16.msra.mxu0 %v399_v56  ;;  %v501_v20 = vld [vmem:[%s863_s1 + $0x4] sm:$0xf0]  ;;  %v438_v21 = vld [vmem:[%s863_s1 + $0x80] sm:$0xf]  ;;  %v451_v22 = vor.u32 %v518_v14, %v448_v15  ;;  %v500_v24 = vld [vmem:[%s863_s1 + $0x4] sm:$0xf] }
  0x15   :  { %269 = vmatpush.bf16.msra.mxu1 %v463_v57  ;;  %298 = vmatpush.bf16.msra.mxu2 %v403_v58  ;;  %v517_v23 = vld [vmem:[%s863_s1 + $0x84] sm:$0xf0]  ;;  %v376_v25 = vld [vmem:[%s863_s1 + $0x8] sm:$0xf0]  ;;  %v516_v26 = vld [vmem:[%s863_s1 + $0x84] sm:$0xf]  ;;  %v375_v28 = vor.u32 %v501_v20, %v374_v19 }
  0x16   :  { %327 = vmatpush.bf16.msra.mxu3 %v467_v62  ;;  %v440_v27 = vld [vmem:[%s863_s1 + $0x88] sm:$0xf0]  ;;  %v14_v29 = vld [vmem:[%s864_s0] sm:$0xff]  ;;  %v16_v30 = vld [vmem:[%s864_s0 + $0x10] sm:$0xff]  ;;  %v439_v31 = vor.u32 %v517_v23, %v438_v21  ;;  %v379_v32 = vor.u32 %v500_v24, %v376_v25 }
  0x17   :  { %v15_v33 = vld [vmem:[%s864_s0 + $0x8] sm:$0xff]  ;;  %v17_v34 = vld [vmem:[%s864_s0 + $0x18] sm:$0xff]  ;;  %v443_v35 = vor.u32 %v516_v26, %v440_v27  ;;  %v30_v36 = vpack.c.bf16 %v16_v30, %v14_v29  ;;  %v18_v38 = vld [vmem:[%s864_s0 + $0x20] sm:$0xff] }
  0x18   :  { %241 = vmatpush.bf16.msra.mxu0 %v391_v4  ;;  %v31_v37 = vpack.c.bf16 %v17_v34, %v15_v33  ;;  %v20_v39 = vld [vmem:[%s864_s0 + $0x30] sm:$0xff]  ;;  %v19_v40 = vld [vmem:[%s864_s0 + $0x28] sm:$0xff]  ;;  %v21_v41 = vld [vmem:[%s864_s0 + $0x38] sm:$0xff] }
  0x19   :  { %270 = vmatpush.bf16.msra.mxu1 %v455_v5  ;;  %299 = vmatpush.bf16.msra.mxu2 %v395_v6  ;;  %v32_v42 = vpack.c.bf16 %v20_v39, %v18_v38  ;;  %v33_v43 = vpack.c.bf16 %v21_v41, %v19_v40  ;;  %v22_v44 = vld [vmem:[%s864_s0 + $0x40] sm:$0xff]  ;;  %v24_v45 = vld [vmem:[%s864_s0 + $0x50] sm:$0xff]  ;;  %v23_v46 = vld [vmem:[%s864_s0 + $0x48] sm:$0xff] }
  0x1a   :  { %328 = vmatpush.bf16.msra.mxu3 %v459_v10  ;;  %v25_v47 = vld [vmem:[%s864_s0 + $0x58] sm:$0xff]  ;;  %v34_v48 = vpack.c.bf16 %v24_v45, %v22_v44  ;;  %v26_v50 = vld [vmem:[%s864_s0 + $0x60] sm:$0xff]  ;;  %v28_v51 = vld [vmem:[%s864_s0 + $0x70] sm:$0xff] }
  0x1b   :  { %v35_v49 = vpack.c.bf16 %v25_v47, %v23_v46  ;;  %v27_v52 = vld [vmem:[%s864_s0 + $0x68] sm:$0xff]  ;;  %v29_v53 = vld [vmem:[%s864_s0 + $0x78] sm:$0xff]  ;;  %v36_v54 = vpack.c.bf16 %v28_v51, %v26_v50  ;;  %v70_v56 = vld [vmem:[%s865_s2] sm:$0x3] }
  0x1c   :  { %242 = vmatpush.bf16.msra.mxu0 %v383_v16  ;;  %v37_v55 = vpack.c.bf16 %v29_v53, %v27_v52  ;;  %v795_v57 = vperm.slane %v70_v56, 0  ;;  %v798_v62 = vperm.slane %v70_v56, 1 }
  0x1d   :  { %271 = vmatpush.bf16.msra.mxu1 %v447_v17  ;;  %300 = vmatpush.bf16.msra.mxu2 %v387_v18 }
  0x1e   :  { %329 = vmatpush.bf16.msra.mxu3 %v451_v22 }
  0x20   :  { %243 = vmatpush.bf16.msra.mxu0 %v375_v28 }
  0x21   :  { %272 = vmatpush.bf16.msra.mxu1 %v439_v31  ;;  %301 = vmatpush.bf16.msra.mxu2 %v379_v32 }
  0x22   :  { %330 = vmatpush.bf16.msra.mxu3 %v443_v35 }
  0x23   :  { %244 = vmatmul.bf16.vlgmr.msra.gmra.mxu0 %v30_v36 }
  0x24   :  { %273 = vmatmul.bf16.vlgmr.msra.gmra.mxu1 %v31_v37  ;;  %302 = vmatmul.bf16.vlgmr.msra.gmra.mxu2 %v30_v36 }
  0x25   :  { %331 = vmatmul.bf16.vlgmr.msra.gmra.mxu3 %v31_v37 }
  0x33   :  { %249 = vmatmul.bf16.gmra.mxu0 %v32_v42 }
  0x34   :  { %278 = vmatmul.bf16.gmra.mxu1 %v33_v43  ;;  %307 = vmatmul.bf16.gmra.mxu2 %v32_v42 }
  0x35   :  { %336 = vmatmul.bf16.gmra.mxu3 %v33_v43 }
  0x43   :  { %254 = vmatmul.bf16.gmra.mxu0 %v34_v48 }
  0x44   :  { %283 = vmatmul.bf16.gmra.mxu1 %v35_v49  ;;  %312 = vmatmul.bf16.gmra.mxu2 %v34_v48 }
  0x45   :  { %341 = vmatmul.bf16.gmra.mxu3 %v35_v49 }
  0x53   :  { %259 = vmatmul.bf16.gmra.mxu0 %v36_v54 }
  0x54   :  { %288 = vmatmul.bf16.gmra.mxu1 %v37_v55  ;;  %317 = vmatmul.bf16.gmra.mxu2 %v36_v54 }
  0x55   :  { %346 = vmatmul.bf16.gmra.mxu3 %v37_v55 }
  0xa0   :  { %v245_v58 = vpop.f32.mrf.mxu0 }
  0xa1   :  { %v246_v59 = vadd.f32 %v245_v58, %v795_v57  ;;  %v274_v60 = vpop.f32.mrf.mxu1 }
  0xa3   :  { %v275_v61 = vadd.f32 %v274_v60, %v246_v59 }
  0xa5   :  { %352 = vst [vmem:[%s866_s3] sm:$0xff] %v275_v61 }
  0xa7   :  { %v303_v63 = vpop.f32.mrf.mxu2 }
  0xa8   :  { %v304_v0 = vadd.f32 %v303_v63, %v798_v62  ;;  %v332_v1 = vpop.f32.mrf.mxu3  ;;  %v247_v2 = vpop.f32.mrf.mxu0 }
  0xa9   :  { %v248_v3 = vadd.f32 %v247_v2, %v795_v57  ;;  %v276_v4 = vpop.f32.mrf.mxu1 }
  0xaa   :  { %v333_v5 = vadd.f32 %v332_v1, %v304_v0 }
  0xab   :  { %v277_v6 = vadd.f32 %v276_v4, %v248_v3 }
  0xac   :  { %353 = vst [vmem:[%s866_s3 + $0x8] sm:$0xff] %v333_v5 }
  0xad   :  { %354 = vst [vmem:[%s866_s3 + $0x10] sm:$0xff] %v277_v6 }
  0xaf   :  { %v305_v7 = vpop.f32.mrf.mxu2 }
  0xb0   :  { %v306_v8 = vadd.f32 %v305_v7, %v798_v62  ;;  %v334_v9 = vpop.f32.mrf.mxu3  ;;  %v250_v10 = vpop.f32.mrf.mxu0 }
  0xb1   :  { %v251_v11 = vadd.f32 %v250_v10, %v795_v57  ;;  %v279_v12 = vpop.f32.mrf.mxu1 }
  0xb2   :  { %v335_v13 = vadd.f32 %v334_v9, %v306_v8 }
  0xb3   :  { %v280_v14 = vadd.f32 %v279_v12, %v251_v11 }
  0xb4   :  { %355 = vst [vmem:[%s866_s3 + $0x18] sm:$0xff] %v335_v13 }
  0xb5   :  { %356 = vst [vmem:[%s866_s3 + $0x20] sm:$0xff] %v280_v14 }
  0xb7   :  { %v308_v15 = vpop.f32.mrf.mxu2 }
  0xb8   :  { %v309_v16 = vadd.f32 %v308_v15, %v798_v62  ;;  %v337_v17 = vpop.f32.mrf.mxu3  ;;  %v252_v18 = vpop.f32.mrf.mxu0 }
  0xb9   :  { %v253_v19 = vadd.f32 %v252_v18, %v795_v57  ;;  %v281_v20 = vpop.f32.mrf.mxu1 }
  0xba   :  { %v338_v21 = vadd.f32 %v337_v17, %v309_v16 }
  0xbb   :  { %v282_v22 = vadd.f32 %v281_v20, %v253_v19 }
  0xbc   :  { %357 = vst [vmem:[%s866_s3 + $0x28] sm:$0xff] %v338_v21 }
  0xbd   :  { %358 = vst [vmem:[%s866_s3 + $0x30] sm:$0xff] %v282_v22 }
  0xbf   :  { %v310_v23 = vpop.f32.mrf.mxu2 }
  0xc0   :  { %v311_v24 = vadd.f32 %v310_v23, %v798_v62  ;;  %v339_v25 = vpop.f32.mrf.mxu3  ;;  %v255_v26 = vpop.f32.mrf.mxu0 }
  0xc1   :  { %v256_v27 = vadd.f32 %v255_v26, %v795_v57  ;;  %v284_v28 = vpop.f32.mrf.mxu1 }
  0xc2   :  { %v340_v29 = vadd.f32 %v339_v25, %v311_v24 }
  0xc3   :  { %v285_v30 = vadd.f32 %v284_v28, %v256_v27 }
  0xc4   :  { %359 = vst [vmem:[%s866_s3 + $0x38] sm:$0xff] %v340_v29 }
  0xc5   :  { %360 = vst [vmem:[%s866_s3 + $0x40] sm:$0xff] %v285_v30 }
  0xc7   :  { %v313_v31 = vpop.f32.mrf.mxu2 }
  0xc8   :  { %v314_v32 = vadd.f32 %v313_v31, %v798_v62  ;;  %v342_v33 = vpop.f32.mrf.mxu3  ;;  %v257_v34 = vpop.f32.mrf.mxu0 }
  0xc9   :  { %v258_v35 = vadd.f32 %v257_v34, %v795_v57  ;;  %v286_v36 = vpop.f32.mrf.mxu1 }
  0xca   :  { %v343_v37 = vadd.f32 %v342_v33, %v314_v32 }
  0xcb   :  { %v287_v38 = vadd.f32 %v286_v36, %v258_v35 }
  0xcc   :  { %361 = vst [vmem:[%s866_s3 + $0x48] sm:$0xff] %v343_v37 }
  0xcd   :  { %362 = vst [vmem:[%s866_s3 + $0x50] sm:$0xff] %v287_v38 }
  0xcf   :  { %v315_v39 = vpop.f32.mrf.mxu2 }
  0xd0   :  { %v316_v40 = vadd.f32 %v315_v39, %v798_v62  ;;  %v344_v41 = vpop.f32.mrf.mxu3  ;;  %v260_v42 = vpop.f32.mrf.mxu0 }
  0xd1   :  { %v261_v43 = vadd.f32 %v260_v42, %v795_v57  ;;  %v289_v44 = vpop.f32.mrf.mxu1 }
  0xd2   :  { %v345_v45 = vadd.f32 %v344_v41, %v316_v40 }
  0xd3   :  { %v290_v46 = vadd.f32 %v289_v44, %v261_v43 }
  0xd4   :  { %363 = vst [vmem:[%s866_s3 + $0x58] sm:$0xff] %v345_v45 }
  0xd5   :  { %364 = vst [vmem:[%s866_s3 + $0x60] sm:$0xff] %v290_v46 }
  0xd7   :  { %v318_v47 = vpop.f32.mrf.mxu2 }
  0xd8   :  { %v319_v48 = vadd.f32 %v318_v47, %v798_v62  ;;  %v347_v49 = vpop.f32.mrf.mxu3  ;;  %v262_v50 = vpop.f32.mrf.mxu0 }
  0xd9   :  { %v263_v51 = vadd.f32 %v262_v50, %v795_v57  ;;  %v291_v53 = vpop.f32.mrf.mxu1 }
  0xda   :  { %v348_v52 = vadd.f32 %v347_v49, %v319_v48 }
  0xdb   :  { %v292_v54 = vadd.f32 %v291_v53, %v263_v51 }
  0xdc   :  { %365 = vst [vmem:[%s866_s3 + $0x68] sm:$0xff] %v348_v52 }
  0xdd   :  { %366 = vst [vmem:[%s866_s3 + $0x70] sm:$0xff] %v292_v54 }
  0xdf   :  { %v320_v55 = vpop.f32.mrf.mxu2 }
  0xe0   :  { %v321_v56 = vadd.f32 %v320_v55, %v798_v62  ;;  %v349_v58 = vpop.f32.mrf.mxu3 }
  0xe2   :  { %v350_v59 = vadd.f32 %v349_v58, %v321_v56 }
  0xe4   :  { %367 = vst [vmem:[%s866_s3 + $0x78] sm:$0xff] %v350_v59 }

// kernel: model_forward.2
= control target key start
LH: loop header
LB: loop body
LE: loop exit
PB: predicated region body
PF: predicated region fallthrough
CT: control target
= control target key end

     0   :  { %s2804_s1 = inlined_call_operand.vmem [shape: bf16[128,512], index: 1, kind: input, shape index: {}]   ;;  %s2805_s4 = inlined_call_operand.vmem [shape: f32[8,128], index: 4, kind: input, shape index: {}]   ;;  %s2806_s0 = inlined_call_operand.vmem [shape: f32[8,8,512], index: 0, kind: input, shape index: {}]   ;;  %s2807_s5 = inlined_call_operand.vmem [shape: f32[8,128], index: 5, kind: input, shape index: {}]   ;;  %s2808_s2 = inlined_call_operand.vmem [shape: bf16[128,256], index: 2, kind: input, shape index: {}]   ;;  %s2809_s3 = inlined_call_operand.vmem [shape: f32[1,256], index: 3, kind: input, shape index: {}]   ;;  %s2810_s6 = inlined_call_operand.vmem [shape: f32[8,8,256], index: 6, kind: output, shape index: {0}]   ;;  %s2811_s8 = inlined_call_operand.vmem [shape: f32[8,128], index: 8, kind: output, shape index: {2}]   ;;  %s2812_s7 = inlined_call_operand.vmem [shape: f32[8,128], index: 7, kind: output, shape index: {1}]  }
   0x1   :  { %v1563_v0 = vld [vmem:[%s2804_s1 + $0xe0] sm:$0xf]  ;;  %v1723_v1 = vld [vmem:[%s2804_s1 + $0xec] sm:$0xf0]  ;;  %v1721_v2 = vld [vmem:[%s2804_s1 + $0xe4] sm:$0xf] }
   0x2   :  { %v1923_v3 = vor.u32 %v1723_v1, %v1563_v0  ;;  %v1565_v4 = vld [vmem:[%s2804_s1 + $0xf0] sm:$0xf0]  ;;  %v1547_v5 = vld [vmem:[%s2804_s1 + $0xc0] sm:$0xf]  ;;  %v1719_v6 = vld [vmem:[%s2804_s1 + $0xcc] sm:$0xf0] }
   0x3   :  { %v1934_v7 = vor.u32 %v1721_v2, %v1565_v4  ;;  %v1717_v8 = vld [vmem:[%s2804_s1 + $0xc4] sm:$0xf]  ;;  %v1549_v9 = vld [vmem:[%s2804_s1 + $0xd0] sm:$0xf0]  ;;  %v1943_v10 = vor.u32 %v1719_v6, %v1547_v5  ;;  %v1531_v12 = vld [vmem:[%s2804_s1 + $0xa0] sm:$0xf] }
   0x4   :  { %233 = vmatpush.bf16.msra.mxu2 %v1923_v3  ;;  %359 = vmatpush.bf16.msra.mxu0 %v1923_v3  ;;  %v1947_v11 = vor.u32 %v1717_v8, %v1549_v9  ;;  %v1715_v13 = vld [vmem:[%s2804_s1 + $0xac] sm:$0xf0]  ;;  %v1713_v14 = vld [vmem:[%s2804_s1 + $0xa4] sm:$0xf]  ;;  %v1533_v15 = vld [vmem:[%s2804_s1 + $0xb0] sm:$0xf0] }
   0x5   :  { %246 = vmatpush.bf16.msra.mxu3 %v1934_v7  ;;  %372 = vmatpush.bf16.msra.mxu1 %v1934_v7  ;;  %v1963_v16 = vor.u32 %v1715_v13, %v1531_v12  ;;  %v1967_v17 = vor.u32 %v1713_v14, %v1533_v15  ;;  %v1515_v18 = vld [vmem:[%s2804_s1 + $0x80] sm:$0xf]  ;;  %v1711_v19 = vld [vmem:[%s2804_s1 + $0x8c] sm:$0xf0]  ;;  %v1709_v20 = vld [vmem:[%s2804_s1 + $0x84] sm:$0xf] }
   0x6   :  { %v1517_v21 = vld [vmem:[%s2804_s1 + $0x90] sm:$0xf0]  ;;  %v1983_v22 = vor.u32 %v1711_v19, %v1515_v18  ;;  %v1499_v24 = vld [vmem:[%s2804_s1 + $0x60] sm:$0xf]  ;;  %v1707_v25 = vld [vmem:[%s2804_s1 + $0x6c] sm:$0xf0] }
   0x7   :  { %v1987_v23 = vor.u32 %v1709_v20, %v1517_v21  ;;  %v1705_v26 = vld [vmem:[%s2804_s1 + $0x64] sm:$0xf]  ;;  %v1501_v27 = vld [vmem:[%s2804_s1 + $0x70] sm:$0xf0]  ;;  %v2003_v28 = vor.u32 %v1707_v25, %v1499_v24  ;;  %v1483_v30 = vld [vmem:[%s2804_s1 + $0x40] sm:$0xf] }
   0x8   :  { %234 = vmatpush.bf16.msra.mxu2 %v1943_v10  ;;  %360 = vmatpush.bf16.msra.mxu0 %v1943_v10  ;;  %v2007_v29 = vor.u32 %v1705_v26, %v1501_v27  ;;  %v1703_v31 = vld [vmem:[%s2804_s1 + $0x4c] sm:$0xf0]  ;;  %v1701_v32 = vld [vmem:[%s2804_s1 + $0x44] sm:$0xf]  ;;  %v1485_v33 = vld [vmem:[%s2804_s1 + $0x50] sm:$0xf0] }
   0x9   :  { %247 = vmatpush.bf16.msra.mxu3 %v1947_v11  ;;  %373 = vmatpush.bf16.msra.mxu1 %v1947_v11  ;;  %v2023_v34 = vor.u32 %v1703_v31, %v1483_v30  ;;  %v2027_v35 = vor.u32 %v1701_v32, %v1485_v33  ;;  %v1467_v36 = vld [vmem:[%s2804_s1 + $0x20] sm:$0xf]  ;;  %v1699_v37 = vld [vmem:[%s2804_s1 + $0x2c] sm:$0xf0]  ;;  %v1697_v38 = vld [vmem:[%s2804_s1 + $0x24] sm:$0xf] }
   0xa   :  { %v1469_v39 = vld [vmem:[%s2804_s1 + $0x30] sm:$0xf0]  ;;  %v2043_v40 = vor.u32 %v1699_v37, %v1467_v36  ;;  %v1451_v42 = vld [vmem:[%s2804_s1] sm:$0xf]  ;;  %v1695_v43 = vld [vmem:[%s2804_s1 + $0xc] sm:$0xf0] }
   0xb   :  { %v2047_v41 = vor.u32 %v1697_v38, %v1469_v39  ;;  %v1693_v44 = vld [vmem:[%s2804_s1 + $0x4] sm:$0xf]  ;;  %v1453_v45 = vld [vmem:[%s2804_s1 + $0x10] sm:$0xf0]  ;;  %v1571_v46 = vld [vmem:[%s2804_s1 + $0xe8] sm:$0xf]  ;;  %v2075_v50 = vor.u32 %v1695_v43, %v1451_v42 }
   0xc   :  { %235 = vmatpush.bf16.msra.mxu2 %v1963_v16  ;;  %361 = vmatpush.bf16.msra.mxu0 %v1963_v16  ;;  %v1724_v47 = vld [vmem:[%s2804_s1 + $0xf4] sm:$0xf0]  ;;  %v1722_v48 = vld [vmem:[%s2804_s1 + $0xec] sm:$0xf]  ;;  %v1573_v49 = vld [vmem:[%s2804_s1 + $0xf8] sm:$0xf0]  ;;  %v2079_v51 = vor.u32 %v1693_v44, %v1453_v45 }
   0xd   :  { %248 = vmatpush.bf16.msra.mxu3 %v1967_v17  ;;  %374 = vmatpush.bf16.msra.mxu1 %v1967_v17  ;;  %v2081_v52 = vor.u32 %v1724_v47, %v1571_v46  ;;  %v30_v53 = vld [vmem:[%s2805_s4] sm:$0xff]  ;;  %v2087_v54 = vor.u32 %v1722_v48, %v1573_v49  ;;  %v1555_v55 = vld [vmem:[%s2804_s1 + $0xc8] sm:$0xf]  ;;  %v1720_v56 = vld [vmem:[%s2804_s1 + $0xd4] sm:$0xf0] }
   0xe   :  { %v1718_v57 = vld [vmem:[%s2804_s1 + $0xcc] sm:$0xf]  ;;  %v1557_v58 = vld [vmem:[%s2804_s1 + $0xd8] sm:$0xf0]  ;;  %v2102_v59 = vpack.c.bf16 %v30_v53, %v30_v53  ;;  %v2107_v60 = vor.u32 %v1720_v56, %v1555_v55  ;;  %v1539_v62 = vld [vmem:[%s2804_s1 + $0xa8] sm:$0xf] }
   0xf   :  { %v2110_v61 = vor.u32 %v1718_v57, %v1557_v58  ;;  %v1716_v63 = vld [vmem:[%s2804_s1 + $0xb4] sm:$0xf0]  ;;  %v1714_v0 = vld [vmem:[%s2804_s1 + $0xac] sm:$0xf]  ;;  %v1541_v1 = vld [vmem:[%s2804_s1 + $0xb8] sm:$0xf0] }
  0x10   :  { %236 = vmatpush.bf16.msra.mxu2 %v1983_v22  ;;  %362 = vmatpush.bf16.msra.mxu0 %v1983_v22  ;;  %v2130_v2 = vor.u32 %v1716_v63, %v1539_v62  ;;  %v2133_v4 = vor.u32 %v1714_v0, %v1541_v1  ;;  %v1523_v5 = vld [vmem:[%s2804_s1 + $0x88] sm:$0xf]  ;;  %v1712_v6 = vld [vmem:[%s2804_s1 + $0x94] sm:$0xf0]  ;;  %v1710_v8 = vld [vmem:[%s2804_s1 + $0x8c] sm:$0xf] }
  0x11   :  { %249 = vmatpush.bf16.msra.mxu3 %v1987_v23  ;;  %375 = vmatpush.bf16.msra.mxu1 %v1987_v23  ;;  %v1525_v9 = vld [vmem:[%s2804_s1 + $0x98] sm:$0xf0]  ;;  %v2150_v12 = vor.u32 %v1712_v6, %v1523_v5  ;;  %v1507_v14 = vld [vmem:[%s2804_s1 + $0x68] sm:$0xf]  ;;  %v1708_v15 = vld [vmem:[%s2804_s1 + $0x74] sm:$0xf0] }
  0x12   :  { %v2153_v13 = vor.u32 %v1710_v8, %v1525_v9  ;;  %v1706_v18 = vld [vmem:[%s2804_s1 + $0x6c] sm:$0xf]  ;;  %v1509_v19 = vld [vmem:[%s2804_s1 + $0x78] sm:$0xf0]  ;;  %v2170_v20 = vor.u32 %v1708_v15, %v1507_v14  ;;  %v1491_v24 = vld [vmem:[%s2804_s1 + $0x48] sm:$0xf] }
  0x13   :  { %v2173_v21 = vor.u32 %v1706_v18, %v1509_v19  ;;  %v1704_v25 = vld [vmem:[%s2804_s1 + $0x54] sm:$0xf0]  ;;  %v1702_v26 = vld [vmem:[%s2804_s1 + $0x4c] sm:$0xf]  ;;  %v1493_v27 = vld [vmem:[%s2804_s1 + $0x58] sm:$0xf0] }
  0x14   :  { %237 = vmatpush.bf16.msra.mxu2 %v2003_v28  ;;  %363 = vmatpush.bf16.msra.mxu0 %v2003_v28  ;;  %v2190_v30 = vor.u32 %v1704_v25, %v1491_v24  ;;  %v2193_v31 = vor.u32 %v1702_v26, %v1493_v27  ;;  %v1475_v32 = vld [vmem:[%s2804_s1 + $0x28] sm:$0xf]  ;;  %v1700_v33 = vld [vmem:[%s2804_s1 + $0x34] sm:$0xf0]  ;;  %v1698_v36 = vld [vmem:[%s2804_s1 + $0x2c] sm:$0xf] }
  0x15   :  { %250 = vmatpush.bf16.msra.mxu3 %v2007_v29  ;;  %376 = vmatpush.bf16.msra.mxu1 %v2007_v29  ;;  %v1477_v37 = vld [vmem:[%s2804_s1 + $0x38] sm:$0xf0]  ;;  %v2210_v38 = vor.u32 %v1700_v33, %v1475_v32  ;;  %v1459_v42 = vld [vmem:[%s2804_s1 + $0x8] sm:$0xf]  ;;  %v1696_v43 = vld [vmem:[%s2804_s1 + $0x14] sm:$0xf0] }
  0x16   :  { %v2213_v39 = vor.u32 %v1698_v36, %v1477_v37  ;;  %v1694_v44 = vld [vmem:[%s2804_s1 + $0xc] sm:$0xf]  ;;  %v1461_v45 = vld [vmem:[%s2804_s1 + $0x18] sm:$0xf0]  ;;  %v2230_v46 = vor.u32 %v1696_v43, %v1459_v42  ;;  %v68_v48 = vld [vmem:[%s2806_s0] sm:$0xff] }
  0x17   :  { %v2233_v47 = vor.u32 %v1694_v44, %v1461_v45  ;;  %v69_v49 = vld [vmem:[%s2806_s0 + $0x8] sm:$0xff]  ;;  %v71_v18 = vld [vmem:[%s2806_s0 + $0x18] sm:$0xff]  ;;  %v70_v26 = vld [vmem:[%s2806_s0 + $0x10] sm:$0xff] }
  0x18   :  { %238 = vmatpush.bf16.msra.mxu2 %v2023_v34  ;;  %364 = vmatpush.bf16.msra.mxu0 %v2023_v34 }
  0x19   :  { %251 = vmatpush.bf16.msra.mxu3 %v2027_v35  ;;  %377 = vmatpush.bf16.msra.mxu1 %v2027_v35 }
  0x1c   :  { %239 = vmatpush.bf16.msra.mxu2 %v2043_v40  ;;  %365 = vmatpush.bf16.msra.mxu0 %v2043_v40 }
  0x1d   :  { %252 = vmatpush.bf16.msra.mxu3 %v2047_v41  ;;  %378 = vmatpush.bf16.msra.mxu1 %v2047_v41 }
  0x20   :  { %240 = vmatpush.bf16.msra.mxu2 %v2075_v50  ;;  %366 = vmatpush.bf16.msra.mxu0 %v2075_v50 }
  0x21   :  { %253 = vmatpush.bf16.msra.mxu3 %v2079_v51  ;;  %379 = vmatpush.bf16.msra.mxu1 %v2079_v51 }
  0x23   :  { %241 = vmatmul.bf16.vlgmr.msra.gmra.mxu2 %v2102_v59 }
  0x24   :  { %259 = vmatpush.bf16.msrb.mxu2 %v2081_v52  ;;  %486 = vmatpush.bf16.msrb.mxu0 %v1923_v3 }
  0x25   :  { %272 = vmatpush.bf16.msrb.mxu3 %v2087_v54  ;;  %499 = vmatpush.bf16.msrb.mxu1 %v1934_v7 }
  0x26   :  { %254 = vmatmul.bf16.vlgmr.msra.gmra.mxu3 %v2102_v59 }
  0x28   :  { %260 = vmatpush.bf16.msrb.mxu2 %v2107_v60  ;;  %487 = vmatpush.bf16.msrb.mxu0 %v1943_v10 }
  0x29   :  { %273 = vmatpush.bf16.msrb.mxu3 %v2110_v61  ;;  %500 = vmatpush.bf16.msrb.mxu1 %v1947_v11 }
  0x2c   :  { %261 = vmatpush.bf16.msrb.mxu2 %v2130_v2  ;;  %488 = vmatpush.bf16.msrb.mxu0 %v1963_v16 }
  0x2d   :  { %274 = vmatpush.bf16.msrb.mxu3 %v2133_v4  ;;  %501 = vmatpush.bf16.msrb.mxu1 %v1967_v17 }
  0x30   :  { %262 = vmatpush.bf16.msrb.mxu2 %v2150_v12  ;;  %489 = vmatpush.bf16.msrb.mxu0 %v1983_v22 }
  0x31   :  { %275 = vmatpush.bf16.msrb.mxu3 %v2153_v13  ;;  %502 = vmatpush.bf16.msrb.mxu1 %v1987_v23 }
  0x34   :  { %263 = vmatpush.bf16.msrb.mxu2 %v2170_v20  ;;  %490 = vmatpush.bf16.msrb.mxu0 %v2003_v28 }
  0x35   :  { %276 = vmatpush.bf16.msrb.mxu3 %v2173_v21  ;;  %503 = vmatpush.bf16.msrb.mxu1 %v2007_v29 }
  0x38   :  { %264 = vmatpush.bf16.msrb.mxu2 %v2190_v30  ;;  %491 = vmatpush.bf16.msrb.mxu0 %v2023_v34 }
  0x39   :  { %277 = vmatpush.bf16.msrb.mxu3 %v2193_v31  ;;  %504 = vmatpush.bf16.msrb.mxu1 %v2027_v35 }
  0x3c   :  { %265 = vmatpush.bf16.msrb.mxu2 %v2210_v38  ;;  %492 = vmatpush.bf16.msrb.mxu0 %v2043_v40 }
  0x3d   :  { %278 = vmatpush.bf16.msrb.mxu3 %v2213_v39  ;;  %505 = vmatpush.bf16.msrb.mxu1 %v2047_v41 }
  0x40   :  { %266 = vmatpush.bf16.msrb.mxu2 %v2230_v46  ;;  %493 = vmatpush.bf16.msrb.mxu0 %v2075_v50 }
  0x41   :  { %279 = vmatpush.bf16.msrb.mxu3 %v2233_v47  ;;  %506 = vmatpush.bf16.msrb.mxu1 %v2079_v51 }
  0x43   :  { %267 = vmatmul.bf16.vlgmr.msrb.gmra.mxu2 %v2102_v59 }
  0x44   :  { %385 = vmatpush.bf16.msra.mxu2 %v2081_v52  ;;  %280 = vmatmul.bf16.vlgmr.msrb.gmra.mxu3 %v2102_v59 }
  0x45   :  { %398 = vmatpush.bf16.msra.mxu3 %v2087_v54 }
  0x48   :  { %386 = vmatpush.bf16.msra.mxu2 %v2107_v60 }
  0x49   :  { %399 = vmatpush.bf16.msra.mxu3 %v2110_v61 }
  0x4c   :  { %387 = vmatpush.bf16.msra.mxu2 %v2130_v2 }
  0x4d   :  { %400 = vmatpush.bf16.msra.mxu3 %v2133_v4 }
  0x50   :  { %388 = vmatpush.bf16.msra.mxu2 %v2150_v12 }
  0x51   :  { %401 = vmatpush.bf16.msra.mxu3 %v2153_v13 }
  0x54   :  { %389 = vmatpush.bf16.msra.mxu2 %v2170_v20 }
  0x55   :  { %402 = vmatpush.bf16.msra.mxu3 %v2173_v21 }
  0x58   :  { %390 = vmatpush.bf16.msra.mxu2 %v2190_v30 }
  0x59   :  { %403 = vmatpush.bf16.msra.mxu3 %v2193_v31 }
  0x5c   :  { %391 = vmatpush.bf16.msra.mxu2 %v2210_v38 }
  0x5d   :  { %404 = vmatpush.bf16.msra.mxu3 %v2213_v39 }
  0x60   :  { %392 = vmatpush.bf16.msra.mxu2 %v2230_v46 }
  0x61   :  { %405 = vmatpush.bf16.msra.mxu3 %v2233_v47 }
  0x64   :  { %512 = vmatpush.bf16.msrb.mxu2 %v2081_v52 }
  0x65   :  { %525 = vmatpush.bf16.msrb.mxu3 %v2087_v54 }
  0x68   :  { %513 = vmatpush.bf16.msrb.mxu2 %v2107_v60 }
  0x69   :  { %526 = vmatpush.bf16.msrb.mxu3 %v2110_v61 }
  0x6c   :  { %514 = vmatpush.bf16.msrb.mxu2 %v2130_v2 }
  0x6d   :  { %527 = vmatpush.bf16.msrb.mxu3 %v2133_v4 }
  0x70   :  { %515 = vmatpush.bf16.msrb.mxu2 %v2150_v12 }
  0x71   :  { %528 = vmatpush.bf16.msrb.mxu3 %v2153_v13 }
  0x74   :  { %516 = vmatpush.bf16.msrb.mxu2 %v2170_v20 }
  0x75   :  { %529 = vmatpush.bf16.msrb.mxu3 %v2173_v21 }
  0x78   :  { %517 = vmatpush.bf16.msrb.mxu2 %v2190_v30 }
  0x79   :  { %530 = vmatpush.bf16.msrb.mxu3 %v2193_v31 }
  0x7c   :  { %518 = vmatpush.bf16.msrb.mxu2 %v2210_v38 }
  0x7d   :  { %531 = vmatpush.bf16.msrb.mxu3 %v2213_v39 }
  0x80   :  { %519 = vmatpush.bf16.msrb.mxu2 %v2230_v46 }
  0x81   :  { %532 = vmatpush.bf16.msrb.mxu3 %v2233_v47 }
  0xa6   :  { %v242_v53 = vpop.f32.mrf.mxu2 }
  0xa7   :  { %v285_v56 = vadd.f32 %v242_v53, %v68_v48 }
  0xa9   :  { %v255_v55 = vpop.f32.mrf.mxu3  ;;  %v1577_v58 = vmul.f32 -1.442695, %v285_v56 }
  0xaa   :  { %v286_v57 = vadd.f32 %v255_v55, %v69_v49 }
  0xab   :  { %1741 = vpow2.f32 %v1577_v58 }
  0xac   :  { %v1578_v59 = vmul.f32 -1.442695, %v286_v57 }
  0xae   :  { %1743 = vpow2.f32 %v1578_v59  ;;  %v244_v62 = vpop.f32.mrf.mxu2 }
  0xb1   :  { %v257_v63 = vpop.f32.mrf.mxu3  ;;  %v1742_v0 = vpop.eup %1741 }
  0xb2   :  { %v292_v5 = vadd.f32 1.0, %v1742_v0 }
  0xb4   :  { %v1744_v1 = vpop.eup %1743  ;;  %1745 = vrcp.f32 %v292_v5  ;;  %vm298_vm0 = vweird.f32 %v292_v5  ;;  %v302_v44 = vand.u32 2147483647, %v292_v5  ;;  %v304_v45 = vand.u32 2147483648, %v292_v5 }
  0xb5   :  { %v311_v6 = vadd.f32 1.0, %v1744_v1 }
  0xb6   :  { %vm303_vm6 = vcmp.eq.f32.partialorder %v302_v44, 8.507059e+37  ;;  %v305_v62 = vor.u32 1.1754944e-38, %v304_v45 }
  0xb7   :  { %1747 = vrcp.f32 %v311_v6  ;;  %vm317_vm2 = vweird.f32 %v311_v6  ;;  %v323_v43 = vand.u32 2147483648, %v311_v6  ;;  %v321_v56 = vand.u32 2147483647, %v311_v6 }
  0xb9   :  { %v324_v59 = vor.u32 1.1754944e-38, %v323_v43  ;;  %vm322_vm7 = vcmp.eq.f32.partialorder %v321_v56, 8.507059e+37 }
  0xba   :  { %v1746_v8 = vpop.eup %1745 }
  0xbb   :  { %v294_v15 = vmul.f32 %v1746_v8, %v292_v5  ;;  %vm299_vm1 = vweird.f32 %v1746_v8 }
  0xbc   :  { %vm2287_vm4 = vmor %vm298_vm0, %vm299_vm1 }
  0xbd   :  { %v1748_v9 = vpop.eup %1747  ;;  %v295_v25 = vsub.f32 1.0, %v294_v15 }
  0xbe   :  { %v313_v14 = vmul.f32 %v1748_v9, %v311_v6  ;;  %vm318_vm3 = vweird.f32 %v1748_v9 }
  0xbf   :  { %v296_v42 = vmul.f32 %v1746_v8, %v295_v25  ;;  %vm319_vm5 = vmor %vm317_vm2, %vm318_vm3 }
  0xc0   :  { %v314_v24 = vsub.f32 1.0, %v313_v14  ;;  %v32_v14 = vld [vmem:[%s2807_s5] sm:$0xff] }
  0xc1   :  { %v297_v49 = vadd.f32 %v1746_v8, %v296_v42 }
  0xc2   :  { %v315_v37 = vmul.f32 %v1748_v9, %v314_v24 }
  0xc3   :  { %v301_v63 = vsel %vm2287_vm4, %v1746_v8, %v297_v49  ;;  %v1581_v49 = vld [vmem:[%s2806_s0 + $0x28] sm:$0xff] }
  0xc4   :  { %v316_v55 = vadd.f32 %v1748_v9, %v315_v37  ;;  %v306_v15 = vsel %vm303_vm6, %v305_v62, %v301_v63  ;;  %v1583_v62 = vld [vmem:[%s2806_s0 + $0x38] sm:$0xff] }
  0xc6   :  { %v268_v19 = vpop.f32.mrf.mxu2  ;;  %v320_v0 = vsel %vm319_vm5, %v1748_v9, %v316_v55 }
  0xc7   :  { %v281_v27 = vpop.f32.mrf.mxu3  ;;  %v287_v33 = vadd.f32 %v268_v19, %v70_v26  ;;  %v325_v6 = vsel %vm322_vm7, %v324_v59, %v320_v0 }
  0xc8   :  { %v288_v32 = vadd.f32 %v281_v27, %v71_v18  ;;  %v347_v19 = vmul.f32 %v325_v6, %v32_v14 }
  0xca   :  { %v1579_v36 = vmul.f32 -1.442695, %v288_v32 }
  0xcc   :  { %1749 = vpow2.f32 %v1579_v36 }
  0xcd   :  { %1751 = vtanh.f32 %v287_v33 }
  0xce   :  { %v270_v48 = vpop.f32.mrf.mxu2 }
  0xcf   :  { %v283_v57 = vpop.f32.mrf.mxu3  ;;  %v1580_v48 = vld [vmem:[%s2806_s0 + $0x20] sm:$0xff] }
  0xd2   :  { %v1750_v58 = vpop.eup %1749 }
  0xd3   :  { %v331_v1 = vadd.f32 1.0, %v1750_v58  ;;  %v1752_v5 = vpop.eup %1751 }
  0xd4   :  { %v348_v18 = vmul.f32 %v1752_v5, %v306_v15 }
  0xd5   :  { %1753 = vrcp.f32 %v331_v1  ;;  %v343_v8 = vand.u32 2147483648, %v331_v1  ;;  %v341_v32 = vand.u32 2147483647, %v331_v1  ;;  %vm337_vm9 = vweird.f32 %v331_v1 }
  0xd6   :  { %v2296_v25 = vadd.f32 %v348_v18, %v347_v19 }
  0xd7   :  { %v344_v36 = vor.u32 1.1754944e-38, %v343_v8  ;;  %vm342_vm11 = vcmp.eq.f32.partialorder %v341_v32, 8.507059e+37  ;;  %v1582_v8 = vld [vmem:[%s2806_s0 + $0x30] sm:$0xff] }
  0xd8   :  { %1755 = vtanh.f32 %v2296_v25 }
  0xdb   :  { %v1754_v24 = vpop.eup %1753 }
  0xdc   :  { %v333_v26 = vmul.f32 %v1754_v24, %v331_v1  ;;  %vm338_vm8 = vweird.f32 %v1754_v24 }
  0xdd   :  { %vm339_vm10 = vmor %vm337_vm9, %vm338_vm8 }
  0xde   :  { %v334_v27 = vsub.f32 1.0, %v333_v26  ;;  %v1756_v42 = vpop.eup %1755 }
  0xe0   :  { %v335_v9 = vmul.f32 %v1754_v24, %v334_v27 }
  0xe2   :  { %v336_v33 = vadd.f32 %v1754_v24, %v335_v9 }
  0xe4   :  { %v340_v37 = vsel %vm339_vm10, %v1754_v24, %v336_v33 }
  0xe5   :  { %v345_v43 = vsel %vm342_vm11, %v344_v36, %v340_v37 }
  0xe6   :  { %v2299_v44 = vmul.f32 %v1756_v42, %v345_v43 }
  0xe8   :  { %v358_v45 = vpack.c.bf16 %v2299_v44, %v2299_v44 }
  0xea   :  { %367 = vmatmul.bf16.vlgmr.msra.gmra.mxu0 %v358_v45  ;;  %380 = vmatmul.bf16.vlgmr.msra.gmra.mxu1 %v358_v45 }
  0xeb   :  { %393 = vmatmul.bf16.vlgmr.msra.gmra.mxu2 %v358_v45  ;;  %406 = vmatmul.bf16.vlgmr.msra.gmra.mxu3 %v358_v45 }
  0xec   :  { %613 = vmatpush.bf16.msra.mxu0 %v1923_v3  ;;  %626 = vmatpush.bf16.msra.mxu1 %v1934_v7 }
  0xed   :  { %639 = vmatpush.bf16.msra.mxu2 %v2081_v52  ;;  %652 = vmatpush.bf16.msra.mxu3 %v2087_v54 }
  0xf0   :  { %614 = vmatpush.bf16.msra.mxu0 %v1943_v10  ;;  %627 = vmatpush.bf16.msra.mxu1 %v1947_v11 }
  0xf1   :  { %640 = vmatpush.bf16.msra.mxu2 %v2107_v60  ;;  %653 = vmatpush.bf16.msra.mxu3 %v2110_v61 }
  0xf4   :  { %615 = vmatpush.bf16.msra.mxu0 %v1963_v16  ;;  %628 = vmatpush.bf16.msra.mxu1 %v1967_v17 }
  0xf5   :  { %641 = vmatpush.bf16.msra.mxu2 %v2130_v2  ;;  %654 = vmatpush.bf16.msra.mxu3 %v2133_v4 }
  0xf8   :  { %616 = vmatpush.bf16.msra.mxu0 %v1983_v22  ;;  %629 = vmatpush.bf16.msra.mxu1 %v1987_v23 }
  0xf9   :  { %642 = vmatpush.bf16.msra.mxu2 %v2150_v12  ;;  %655 = vmatpush.bf16.msra.mxu3 %v2153_v13 }
  0xfc   :  { %617 = vmatpush.bf16.msra.mxu0 %v2003_v28  ;;  %630 = vmatpush.bf16.msra.mxu1 %v2007_v29 }
  0xfd   :  { %643 = vmatpush.bf16.msra.mxu2 %v2170_v20  ;;  %656 = vmatpush.bf16.msra.mxu3 %v2173_v21 }
 0x100   :  { %618 = vmatpush.bf16.msra.mxu0 %v2023_v34  ;;  %631 = vmatpush.bf16.msra.mxu1 %v2027_v35 }
 0x101   :  { %644 = vmatpush.bf16.msra.mxu2 %v2190_v30  ;;  %657 = vmatpush.bf16.msra.mxu3 %v2193_v31 }
 0x104   :  { %619 = vmatpush.bf16.msra.mxu0 %v2043_v40  ;;  %632 = vmatpush.bf16.msra.mxu1 %v2047_v41 }
 0x105   :  { %645 = vmatpush.bf16.msra.mxu2 %v2210_v38  ;;  %658 = vmatpush.bf16.msra.mxu3 %v2213_v39 }
 0x108   :  { %620 = vmatpush.bf16.msra.mxu0 %v2075_v50  ;;  %633 = vmatpush.bf16.msra.mxu1 %v2079_v51 }
 0x109   :  { %646 = vmatpush.bf16.msra.mxu2 %v2230_v46  ;;  %659 = vmatpush.bf16.msra.mxu3 %v2233_v47 }
 0x167   :  { %v368_v53 = vpop.f32.mrf.mxu0  ;;  %v381_v55 = vpop.f32.mrf.mxu1 }
 0x168   :  { %v411_v56 = vadd.f32 %v1580_v48, %v368_v53  ;;  %v412_v57 = vadd.f32 %v1581_v49, %v381_v55 }
 0x16a   :  { %v1584_v58 = vmul.f32 -1.442695, %v411_v56  ;;  %v1585_v59 = vmul.f32 -1.442695, %v412_v57 }
 0x16c   :  { %1757 = vpow2.f32 %v1584_v58 }
 0x16d   :  { %1759 = vpow2.f32 %v1585_v59 }
 0x16e   :  { %v394_v63 = vpop.f32.mrf.mxu2  ;;  %v407_v0 = vpop.f32.mrf.mxu3 }
 0x16f   :  { %v414_v1 = vadd.f32 %v1583_v62, %v407_v0  ;;  %v370_v5 = vpop.f32.mrf.mxu0  ;;  %v383_v14 = vpop.f32.mrf.mxu1  ;;  %v413_v36 = vadd.f32 %v1582_v8, %v394_v63 }
 0x171   :  { %v1586_v15 = vmul.f32 -1.442695, %v414_v1 }
 0x172   :  { %v1758_v6 = vpop.eup %1757 }
 0x173   :  { %v1760_v18 = vpop.eup %1759  ;;  %v418_v19 = vadd.f32 1.0, %v1758_v6  ;;  %1761 = vpow2.f32 %v1586_v15 }
 0x174   :  { %v437_v24 = vadd.f32 1.0, %v1760_v18 }
 0x175   :  { %1763 = vrcp.f32 %v418_v19  ;;  %v430_v49 = vand.u32 2147483648, %v418_v19  ;;  %v428_v56 = vand.u32 2147483647, %v418_v19  ;;  %vm424_vm14 = vweird.f32 %v418_v19 }
 0x176   :  { %1765 = vrcp.f32 %v437_v24  ;;  %v396_v26 = vpop.f32.mrf.mxu2  ;;  %v409_v27 = vpop.f32.mrf.mxu3  ;;  %v449_v53 = vand.u32 2147483648, %v437_v24  ;;  %v447_v58 = vand.u32 2147483647, %v437_v24  ;;  %vm443_vm15 = vweird.f32 %v437_v24 }
 0x177   :  { %v431_v63 = vor.u32 1.1754944e-38, %v430_v49  ;;  %vm429_vm2 = vcmp.eq.f32.partialorder %v428_v56, 8.507059e+37 }
 0x178   :  { %v450_v5 = vor.u32 1.1754944e-38, %v449_v53  ;;  %vm448_vm3 = vcmp.eq.f32.partialorder %v447_v58, 8.507059e+37  ;;  %v1588_v53 = vld [vmem:[%s2806_s0 + $0x48] sm:$0xff] }
 0x179   :  { %v1762_v9 = vpop.eup %1761 }
 0x17a   :  { %v457_v32 = vadd.f32 1.0, %v1762_v9 }
 0x17b   :  { %v1764_v33 = vpop.eup %1763 }
 0x17c   :  { %v1766_v37 = vpop.eup %1765  ;;  %v420_v42 = vmul.f32 %v1764_v33, %v418_v19  ;;  %1767 = vrcp.f32 %v457_v32  ;;  %vm425_vm12 = vweird.f32 %v1764_v33  ;;  %vm463_vm5 = vweird.f32 %v457_v32 }
 0x17d   :  { %v439_v43 = vmul.f32 %v1766_v37, %v437_v24  ;;  %1769 = vtanh.f32 %v413_v36  ;;  %vm444_vm13 = vweird.f32 %v1766_v37  ;;  %vm426_vm0 = vmor %vm424_vm14, %vm425_vm12 }
 0x17e   :  { %v421_v45 = vsub.f32 1.0, %v420_v42  ;;  %vm445_vm1 = vmor %vm443_vm15, %vm444_vm13  ;;  %v469_v42 = vand.u32 2147483648, %v457_v32 }
 0x17f   :  { %v440_v48 = vsub.f32 1.0, %v439_v43 }
 0x180   :  { %v422_v55 = vmul.f32 %v1764_v33, %v421_v45  ;;  %v470_v45 = vor.u32 1.1754944e-38, %v469_v42 }
 0x181   :  { %v441_v57 = vmul.f32 %v1766_v37, %v440_v48 }
 0x182   :  { %v1768_v59 = vpop.eup %1767  ;;  %v423_v62 = vadd.f32 %v1764_v33, %v422_v55 }
 0x183   :  { %v442_v0 = vadd.f32 %v1766_v37, %v441_v57  ;;  %v459_v1 = vmul.f32 %v1768_v59, %v457_v32  ;;  %v1770_v15 = vpop.eup %1769  ;;  %vm464_vm4 = vweird.f32 %v1768_v59 }
 0x184   :  { %v427_v14 = vsel %vm426_vm0, %v1764_v33, %v423_v62  ;;  %v467_v33 = vand.u32 2147483647, %v457_v32  ;;  %vm465_vm6 = vmor %vm463_vm5, %vm464_vm4  ;;  %v1587_v32 = vld [vmem:[%s2806_s0 + $0x40] sm:$0xff] }
 0x185   :  { %v432_v6 = vsel %vm429_vm2, %v431_v63, %v427_v14  ;;  %v446_v18 = vsel %vm445_vm1, %v1766_v37, %v442_v0  ;;  %v460_v26 = vsub.f32 1.0, %v459_v1  ;;  %v1590_v63 = vld [vmem:[%s2806_s0 + $0x58] sm:$0xff] }
 0x186   :  { %v451_v27 = vsel %vm448_vm3, %v450_v5, %v446_v18  ;;  %v474_v8 = vmul.f32 %v1770_v15, %v432_v6  ;;  %vm468_vm7 = vcmp.eq.f32.partialorder %v467_v33, 8.507059e+37 }
 0x187   :  { %v473_v9 = vmul.f32 %v451_v27, %v2296_v25  ;;  %v461_v36 = vmul.f32 %v1768_v59, %v460_v26 }
 0x189   :  { %v2348_v19 = vadd.f32 %v474_v8, %v473_v9  ;;  %v462_v24 = vadd.f32 %v1768_v59, %v461_v36 }
 0x18b   :  { %1771 = vtanh.f32 %v2348_v19  ;;  %v466_v43 = vsel %vm465_vm6, %v1768_v59, %v462_v24  ;;  %v1589_v24 = vld [vmem:[%s2806_s0 + $0x50] sm:$0xff] }
 0x18c   :  { %v471_v48 = vsel %vm468_vm7, %v470_v45, %v466_v43 }
 0x191   :  { %v1772_v37 = vpop.eup %1771 }
 0x192   :  { %v2351_v49 = vmul.f32 %v1772_v37, %v471_v48 }
 0x194   :  { %v485_v25 = vpack.c.bf16 %v2351_v49, %v2351_v49 }
 0x196   :  { %494 = vmatmul.bf16.vlgmr.msrb.gmra.mxu0 %v485_v25  ;;  %507 = vmatmul.bf16.vlgmr.msrb.gmra.mxu1 %v485_v25 }
 0x197   :  { %520 = vmatmul.bf16.vlgmr.msrb.gmra.mxu2 %v485_v25  ;;  %533 = vmatmul.bf16.vlgmr.msrb.gmra.mxu3 %v485_v25 }
 0x198   :  { %740 = vmatpush.bf16.msrb.mxu0 %v1923_v3  ;;  %753 = vmatpush.bf16.msrb.mxu1 %v1934_v7 }
 0x199   :  { %766 = vmatpush.bf16.msrb.mxu2 %v2081_v52  ;;  %779 = vmatpush.bf16.msrb.mxu3 %v2087_v54 }
 0x19c   :  { %741 = vmatpush.bf16.msrb.mxu0 %v1943_v10  ;;  %754 = vmatpush.bf16.msrb.mxu1 %v1947_v11 }
 0x19d   :  { %767 = vmatpush.bf16.msrb.mxu2 %v2107_v60  ;;  %780 = vmatpush.bf16.msrb.mxu3 %v2110_v61 }
 0x1a0   :  { %742 = vmatpush.bf16.msrb.mxu0 %v1963_v16  ;;  %755 = vmatpush.bf16.msrb.mxu1 %v1967_v17 }
 0x1a1   :  { %768 = vmatpush.bf16.msrb.mxu2 %v2130_v2  ;;  %781 = vmatpush.bf16.msrb.mxu3 %v2133_v4 }
 0x1a4   :  { %743 = vmatpush.bf16.msrb.mxu0 %v1983_v22  ;;  %756 = vmatpush.bf16.msrb.mxu1 %v1987_v23 }
 0x1a5   :  { %769 = vmatpush.bf16.msrb.mxu2 %v2150_v12  ;;  %782 = vmatpush.bf16.msrb.mxu3 %v2153_v13 }
 0x1a8   :  { %744 = vmatpush.bf16.msrb.mxu0 %v2003_v28  ;;  %757 = vmatpush.bf16.msrb.mxu1 %v2007_v29 }
 0x1a9   :  { %770 = vmatpush.bf16.msrb.mxu2 %v2170_v20  ;;  %783 = vmatpush.bf16.msrb.mxu3 %v2173_v21 }
 0x1ac   :  { %745 = vmatpush.bf16.msrb.mxu0 %v2023_v34  ;;  %758 = vmatpush.bf16.msrb.mxu1 %v2027_v35 }
 0x1ad   :  { %771 = vmatpush.bf16.msrb.mxu2 %v2190_v30  ;;  %784 = vmatpush.bf16.msrb.mxu3 %v2193_v31 }
 0x1b0   :  { %746 = vmatpush.bf16.msrb.mxu0 %v2043_v40  ;;  %759 = vmatpush.bf16.msrb.mxu1 %v2047_v41 }
 0x1b1   :  { %772 = vmatpush.bf16.msrb.mxu2 %v2210_v38  ;;  %785 = vmatpush.bf16.msrb.mxu3 %v2213_v39 }
 0x1b4   :  { %747 = vmatpush.bf16.msrb.mxu0 %v2075_v50  ;;  %760 = vmatpush.bf16.msrb.mxu1 %v2079_v51 }
 0x1b5   :  { %773 = vmatpush.bf16.msrb.mxu2 %v2230_v46  ;;  %786 = vmatpush.bf16.msrb.mxu3 %v2233_v47 }
 0x213   :  { %v495_v55 = vpop.f32.mrf.mxu0  ;;  %v508_v56 = vpop.f32.mrf.mxu1 }
 0x214   :  { %v538_v57 = vadd.f32 %v1587_v32, %v495_v55  ;;  %v539_v58 = vadd.f32 %v1588_v53, %v508_v56 }
 0x216   :  { %v1591_v59 = vmul.f32 -1.442695, %v538_v57  ;;  %v1592_v62 = vmul.f32 -1.442695, %v539_v58 }
 0x218   :  { %1773 = vpow2.f32 %v1591_v59 }
 0x219   :  { %1775 = vpow2.f32 %v1592_v62 }
 0x21a   :  { %v521_v0 = vpop.f32.mrf.mxu2  ;;  %v534_v1 = vpop.f32.mrf.mxu3 }
 0x21b   :  { %v541_v5 = vadd.f32 %v1590_v63, %v534_v1  ;;  %v497_v14 = vpop.f32.mrf.mxu0  ;;  %v510_v15 = vpop.f32.mrf.mxu1  ;;  %v540_v45 = vadd.f32 %v1589_v24, %v521_v0 }
 0x21d   :  { %v1593_v6 = vmul.f32 -1.442695, %v541_v5 }
 0x21e   :  { %v1774_v18 = vpop.eup %1773 }
 0x21f   :  { %v1776_v26 = vpop.eup %1775  ;;  %v545_v27 = vadd.f32 1.0, %v1774_v18  ;;  %1777 = vpow2.f32 %v1593_v6 }
 0x220   :  { %v564_v8 = vadd.f32 1.0, %v1776_v26 }
 0x221   :  { %1779 = vrcp.f32 %v545_v27  ;;  %v557_v55 = vand.u32 2147483648, %v545_v27  ;;  %v555_v58 = vand.u32 2147483647, %v545_v27  ;;  %vm551_vm10 = vweird.f32 %v545_v27 }
 0x222   :  { %1781 = vrcp.f32 %v564_v8  ;;  %v523_v9 = vpop.f32.mrf.mxu2  ;;  %v536_v36 = vpop.f32.mrf.mxu3  ;;  %v576_v56 = vand.u32 2147483648, %v564_v8  ;;  %v574_v62 = vand.u32 2147483647, %v564_v8  ;;  %vm570_vm11 = vweird.f32 %v564_v8 }
 0x223   :  { %v558_v0 = vor.u32 1.1754944e-38, %v557_v55  ;;  %vm556_vm14 = vcmp.eq.f32.partialorder %v555_v58, 8.507059e+37 }
 0x224   :  { %v577_v15 = vor.u32 1.1754944e-38, %v576_v56  ;;  %vm575_vm15 = vcmp.eq.f32.partialorder %v574_v62, 8.507059e+37 }
 0x225   :  { %v1778_v42 = vpop.eup %1777 }
 0x226   :  { %v584_v33 = vadd.f32 1.0, %v1778_v42 }
 0x227   :  { %v1780_v43 = vpop.eup %1779 }
 0x228   :  { %v1782_v37 = vpop.eup %1781  ;;  %v547_v48 = vmul.f32 %v1780_v43, %v545_v27  ;;  %1783 = vrcp.f32 %v584_v33  ;;  %vm552_vm8 = vweird.f32 %v1780_v43  ;;  %vm590_vm1 = vweird.f32 %v584_v33 }
 0x229   :  { %v566_v25 = vmul.f32 %v1782_v37, %v564_v8  ;;  %1785 = vtanh.f32 %v540_v45  ;;  %vm571_vm9 = vweird.f32 %v1782_v37  ;;  %vm553_vm12 = vmor %vm551_vm10, %vm552_vm8 }
 0x22a   :  { %v548_v32 = vsub.f32 1.0, %v547_v48  ;;  %vm572_vm13 = vmor %vm570_vm11, %vm571_vm9 }
 0x22b   :  { %v567_v53 = vsub.f32 1.0, %v566_v25  ;;  %v596_v25 = vand.u32 2147483648, %v584_v33 }
 0x22c   :  { %v549_v57 = vmul.f32 %v1780_v43, %v548_v32 }
 0x22d   :  { %v568_v59 = vmul.f32 %v1782_v37, %v567_v53  ;;  %v597_v53 = vor.u32 1.1754944e-38, %v596_v25  ;;  %v1596_v25 = vld [vmem:[%s2806_s0 + $0x70] sm:$0xff] }
 0x22e   :  { %v1784_v63 = vpop.eup %1783  ;;  %v550_v1 = vadd.f32 %v1780_v43, %v549_v57  ;;  %v1595_v57 = vld [vmem:[%s2806_s0 + $0x68] sm:$0xff] }
 0x22f   :  { %v569_v5 = vadd.f32 %v1782_v37, %v568_v59  ;;  %v586_v14 = vmul.f32 %v1784_v63, %v584_v33  ;;  %v1786_v18 = vpop.eup %1785  ;;  %vm591_vm0 = vweird.f32 %v1784_v63 }
 0x230   :  { %v554_v6 = vsel %vm553_vm12, %v1780_v43, %v550_v1  ;;  %v594_v43 = vand.u32 2147483647, %v584_v33  ;;  %vm592_vm2 = vmor %vm590_vm1, %vm591_vm0  ;;  %v1594_v33 = vld [vmem:[%s2806_s0 + $0x60] sm:$0xff] }
 0x231   :  { %v559_v26 = vsel %vm556_vm14, %v558_v0, %v554_v6  ;;  %v573_v9 = vsel %vm572_vm13, %v1782_v37, %v569_v5  ;;  %v587_v36 = vsub.f32 1.0, %v586_v14  ;;  %v1597_v5 = vld [vmem:[%s2806_s0 + $0x78] sm:$0xff] }
 0x232   :  { %v578_v24 = vsel %vm575_vm15, %v577_v15, %v573_v9  ;;  %v601_v42 = vmul.f32 %v1786_v18, %v559_v26  ;;  %vm595_vm3 = vcmp.eq.f32.partialorder %v594_v43, 8.507059e+37 }
 0x233   :  { %v600_v45 = vmul.f32 %v578_v24, %v2348_v19  ;;  %v588_v48 = vmul.f32 %v1784_v63, %v587_v36 }
 0x235   :  { %v2400_v27 = vadd.f32 %v601_v42, %v600_v45  ;;  %v589_v8 = vadd.f32 %v1784_v63, %v588_v48 }
 0x237   :  { %1787 = vtanh.f32 %v2400_v27  ;;  %v593_v32 = vsel %vm592_vm2, %v1784_v63, %v589_v8 }
 0x238   :  { %v598_v55 = vsel %vm595_vm3, %v597_v53, %v593_v32 }
 0x23d   :  { %v1788_v37 = vpop.eup %1787 }
 0x23e   :  { %v2403_v56 = vmul.f32 %v1788_v37, %v598_v55 }
 0x240   :  { %v612_v19 = vpack.c.bf16 %v2403_v56, %v2403_v56 }
 0x242   :  { %621 = vmatmul.bf16.vlgmr.msra.gmra.mxu0 %v612_v19  ;;  %634 = vmatmul.bf16.vlgmr.msra.gmra.mxu1 %v612_v19 }
 0x243   :  { %647 = vmatmul.bf16.vlgmr.msra.gmra.mxu2 %v612_v19  ;;  %660 = vmatmul.bf16.vlgmr.msra.gmra.mxu3 %v612_v19 }
 0x244   :  { %867 = vmatpush.bf16.msra.mxu0 %v1923_v3  ;;  %880 = vmatpush.bf16.msra.mxu1 %v1934_v7 }
 0x245   :  { %893 = vmatpush.bf16.msra.mxu2 %v2081_v52  ;;  %906 = vmatpush.bf16.msra.mxu3 %v2087_v54 }
 0x248   :  { %868 = vmatpush.bf16.msra.mxu0 %v1943_v10  ;;  %881 = vmatpush.bf16.msra.mxu1 %v1947_v11 }
 0x249   :  { %894 = vmatpush.bf16.msra.mxu2 %v2107_v60  ;;  %907 = vmatpush.bf16.msra.mxu3 %v2110_v61 }
 0x24c   :  { %869 = vmatpush.bf16.msra.mxu0 %v1963_v16  ;;  %882 = vmatpush.bf16.msra.mxu1 %v1967_v17 }
 0x24d   :  { %895 = vmatpush.bf16.msra.mxu2 %v2130_v2  ;;  %908 = vmatpush.bf16.msra.mxu3 %v2133_v4 }
 0x250   :  { %870 = vmatpush.bf16.msra.mxu0 %v1983_v22  ;;  %883 = vmatpush.bf16.msra.mxu1 %v1987_v23 }
 0x251   :  { %896 = vmatpush.bf16.msra.mxu2 %v2150_v12  ;;  %909 = vmatpush.bf16.msra.mxu3 %v2153_v13 }
 0x254   :  { %871 = vmatpush.bf16.msra.mxu0 %v2003_v28  ;;  %884 = vmatpush.bf16.msra.mxu1 %v2007_v29 }
 0x255   :  { %897 = vmatpush.bf16.msra.mxu2 %v2170_v20  ;;  %910 = vmatpush.bf16.msra.mxu3 %v2173_v21 }
 0x258   :  { %872 = vmatpush.bf16.msra.mxu0 %v2023_v34  ;;  %885 = vmatpush.bf16.msra.mxu1 %v2027_v35 }
 0x259   :  { %898 = vmatpush.bf16.msra.mxu2 %v2190_v30  ;;  %911 = vmatpush.bf16.msra.mxu3 %v2193_v31 }
 0x25c   :  { %873 = vmatpush.bf16.msra.mxu0 %v2043_v40  ;;  %886 = vmatpush.bf16.msra.mxu1 %v2047_v41 }
 0x25d   :  { %899 = vmatpush.bf16.msra.mxu2 %v2210_v38  ;;  %912 = vmatpush.bf16.msra.mxu3 %v2213_v39 }
 0x260   :  { %874 = vmatpush.bf16.msra.mxu0 %v2075_v50  ;;  %887 = vmatpush.bf16.msra.mxu1 %v2079_v51 }
 0x261   :  { %900 = vmatpush.bf16.msra.mxu2 %v2230_v46  ;;  %913 = vmatpush.bf16.msra.mxu3 %v2233_v47 }
 0x2bf   :  { %v622_v58 = vpop.f32.mrf.mxu0  ;;  %v635_v59 = vpop.f32.mrf.mxu1 }
 0x2c0   :  { %v665_v62 = vadd.f32 %v1594_v33, %v622_v58  ;;  %v666_v63 = vadd.f32 %v1595_v57, %v635_v59 }
 0x2c2   :  { %v1598_v1 = vmul.f32 -1.442695, %v665_v62  ;;  %v1599_v0 = vmul.f32 -1.442695, %v666_v63 }
 0x2c4   :  { %1789 = vpow2.f32 %v1598_v1 }
 0x2c5   :  { %1791 = vpow2.f32 %v1599_v0 }
 0x2c6   :  { %v648_v14 = vpop.f32.mrf.mxu2  ;;  %v661_v15 = vpop.f32.mrf.mxu3 }
 0x2c7   :  { %v668_v6 = vadd.f32 %v1597_v5, %v661_v15  ;;  %v624_v18 = vpop.f32.mrf.mxu0  ;;  %v637_v26 = vpop.f32.mrf.mxu1  ;;  %v667_v37 = vadd.f32 %v1596_v25, %v648_v14 }
 0x2c9   :  { %v1600_v9 = vmul.f32 -1.442695, %v668_v6 }
 0x2ca   :  { %v1790_v36 = vpop.eup %1789 }
 0x2cb   :  { %v1792_v24 = vpop.eup %1791  ;;  %v672_v42 = vadd.f32 1.0, %v1790_v36  ;;  %1793 = vpow2.f32 %v1600_v9 }
 0x2cc   :  { %v691_v45 = vadd.f32 1.0, %v1792_v24 }
 0x2cd   :  { %1795 = vrcp.f32 %v672_v42  ;;  %v684_v59 = vand.u32 2147483648, %v672_v42  ;;  %v682_v1 = vand.u32 2147483647, %v672_v42  ;;  %vm678_vm6 = vweird.f32 %v672_v42 }
 0x2ce   :  { %1797 = vrcp.f32 %v691_v45  ;;  %v650_v48 = vpop.f32.mrf.mxu2  ;;  %v663_v8 = vpop.f32.mrf.mxu3  ;;  %v703_v62 = vand.u32 2147483648, %v691_v45  ;;  %v701_v5 = vand.u32 2147483647, %v691_v45  ;;  %vm697_vm7 = vweird.f32 %v691_v45 }
 0x2cf   :  { %v685_v14 = vor.u32 1.1754944e-38, %v684_v59  ;;  %vm683_vm10 = vcmp.eq.f32.partialorder %v682_v1, 8.507059e+37  ;;  %v1602_v1 = vld [vmem:[%s2806_s0 + $0x88] sm:$0xff] }
 0x2d0   :  { %v704_v9 = vor.u32 1.1754944e-38, %v703_v62  ;;  %vm702_vm11 = vcmp.eq.f32.partialorder %v701_v5, 8.507059e+37 }
 0x2d1   :  { %v1794_v43 = vpop.eup %1793 }
 0x2d2   :  { %v711_v32 = vadd.f32 1.0, %v1794_v43 }
 0x2d3   :  { %v1796_v53 = vpop.eup %1795 }
 0x2d4   :  { %v1798_v55 = vpop.eup %1797  ;;  %v674_v19 = vmul.f32 %v1796_v53, %v672_v42  ;;  %1799 = vrcp.f32 %v711_v32  ;;  %vm679_vm4 = vweird.f32 %v1796_v53  ;;  %vm717_vm13 = vweird.f32 %v711_v32 }
 0x2d5   :  { %v693_v33 = vmul.f32 %v1798_v55, %v691_v45  ;;  %1801 = vtanh.f32 %v667_v37  ;;  %vm698_vm5 = vweird.f32 %v1798_v55  ;;  %vm680_vm8 = vmor %vm678_vm6, %vm679_vm4 }
 0x2d6   :  { %v675_v57 = vsub.f32 1.0, %v674_v19  ;;  %vm699_vm9 = vmor %vm697_vm7, %vm698_vm5 }
 0x2d7   :  { %v694_v58 = vsub.f32 1.0, %v693_v33 }
 0x2d8   :  { %v676_v63 = vmul.f32 %v1796_v53, %v675_v57  ;;  %v723_v57 = vand.u32 2147483648, %v711_v32 }
 0x2d9   :  { %v695_v0 = vmul.f32 %v1798_v55, %v694_v58 }
 0x2da   :  { %v1800_v15 = vpop.eup %1799  ;;  %v677_v6 = vadd.f32 %v1796_v53, %v676_v63  ;;  %v724_v59 = vor.u32 1.1754944e-38, %v723_v57 }
 0x2db   :  { %v696_v18 = vadd.f32 %v1798_v55, %v695_v0  ;;  %v713_v26 = vmul.f32 %v1800_v15, %v711_v32  ;;  %v1802_v24 = vpop.eup %1801  ;;  %vm718_vm12 = vweird.f32 %v1800_v15 }
 0x2dc   :  { %v681_v36 = vsel %vm680_vm8, %v1796_v53, %v677_v6  ;;  %v721_v53 = vand.u32 2147483647, %v711_v32  ;;  %vm719_vm14 = vmor %vm717_vm13, %vm718_vm12  ;;  %v1601_v32 = vld [vmem:[%s2806_s0 + $0x80] sm:$0xff] }
 0x2dd   :  { %v686_v48 = vsel %vm683_vm10, %v685_v14, %v681_v36  ;;  %v700_v8 = vsel %vm699_vm9, %v1798_v55, %v696_v18  ;;  %v714_v25 = vsub.f32 1.0, %v713_v26  ;;  %v1604_v26 = vld [vmem:[%s2806_s0 + $0x98] sm:$0xff] }
 0x2de   :  { %v705_v43 = vsel %vm702_vm11, %v704_v9, %v700_v8  ;;  %v728_v37 = vmul.f32 %v1802_v24, %v686_v48  ;;  %vm722_vm15 = vcmp.eq.f32.partialorder %v721_v53, 8.507059e+37  ;;  %v1603_v53 = vld [vmem:[%s2806_s0 + $0x90] sm:$0xff] }
 0x2df   :  { %v727_v19 = vmul.f32 %v705_v43, %v2400_v27  ;;  %v715_v33 = vmul.f32 %v1800_v15, %v714_v25 }
 0x2e1   :  { %v2452_v42 = vadd.f32 %v728_v37, %v727_v19  ;;  %v716_v45 = vadd.f32 %v1800_v15, %v715_v33 }
 0x2e3   :  { %1803 = vtanh.f32 %v2452_v42  ;;  %v720_v58 = vsel %vm719_vm14, %v1800_v15, %v716_v45 }
 0x2e4   :  { %v725_v62 = vsel %vm722_vm15, %v724_v59, %v720_v58 }
 0x2e9   :  { %v1804_v55 = vpop.eup %1803 }
 0x2ea   :  { %v2455_v63 = vmul.f32 %v1804_v55, %v725_v62 }
 0x2ec   :  { %v739_v27 = vpack.c.bf16 %v2455_v63, %v2455_v63 }
 0x2ee   :  { %748 = vmatmul.bf16.vlgmr.msrb.gmra.mxu0 %v739_v27  ;;  %761 = vmatmul.bf16.vlgmr.msrb.gmra.mxu1 %v739_v27 }
 0x2ef   :  { %774 = vmatmul.bf16.vlgmr.msrb.gmra.mxu2 %v739_v27  ;;  %787 = vmatmul.bf16.vlgmr.msrb.gmra.mxu3 %v739_v27 }
 0x2f0   :  { %994 = vmatpush.bf16.msrb.mxu0 %v1923_v3  ;;  %1007 = vmatpush.bf16.msrb.mxu1 %v1934_v7 }
 0x2f1   :  { %1020 = vmatpush.bf16.msrb.mxu2 %v2081_v52  ;;  %1033 = vmatpush.bf16.msrb.mxu3 %v2087_v54 }
 0x2f4   :  { %995 = vmatpush.bf16.msrb.mxu0 %v1943_v10  ;;  %1008 = vmatpush.bf16.msrb.mxu1 %v1947_v11 }
 0x2f5   :  { %1021 = vmatpush.bf16.msrb.mxu2 %v2107_v60  ;;  %1034 = vmatpush.bf16.msrb.mxu3 %v2110_v61 }
 0x2f8   :  { %996 = vmatpush.bf16.msrb.mxu0 %v1963_v16  ;;  %1009 = vmatpush.bf16.msrb.mxu1 %v1967_v17 }
 0x2f9   :  { %1022 = vmatpush.bf16.msrb.mxu2 %v2130_v2  ;;  %1035 = vmatpush.bf16.msrb.mxu3 %v2133_v4 }
 0x2fc   :  { %997 = vmatpush.bf16.msrb.mxu0 %v1983_v22  ;;  %1010 = vmatpush.bf16.msrb.mxu1 %v1987_v23 }
 0x2fd   :  { %1023 = vmatpush.bf16.msrb.mxu2 %v2150_v12  ;;  %1036 = vmatpush.bf16.msrb.mxu3 %v2153_v13 }
 0x300   :  { %998 = vmatpush.bf16.msrb.mxu0 %v2003_v28  ;;  %1011 = vmatpush.bf16.msrb.mxu1 %v2007_v29 }
 0x301   :  { %1024 = vmatpush.bf16.msrb.mxu2 %v2170_v20  ;;  %1037 = vmatpush.bf16.msrb.mxu3 %v2173_v21 }
 0x304   :  { %999 = vmatpush.bf16.msrb.mxu0 %v2023_v34  ;;  %1012 = vmatpush.bf16.msrb.mxu1 %v2027_v35 }
 0x305   :  { %1025 = vmatpush.bf16.msrb.mxu2 %v2190_v30  ;;  %1038 = vmatpush.bf16.msrb.mxu3 %v2193_v31 }
 0x308   :  { %1000 = vmatpush.bf16.msrb.mxu0 %v2043_v40  ;;  %1013 = vmatpush.bf16.msrb.mxu1 %v2047_v41 }
 0x309   :  { %1026 = vmatpush.bf16.msrb.mxu2 %v2210_v38  ;;  %1039 = vmatpush.bf16.msrb.mxu3 %v2213_v39 }
 0x30c   :  { %1001 = vmatpush.bf16.msrb.mxu0 %v2075_v50  ;;  %1014 = vmatpush.bf16.msrb.mxu1 %v2079_v51 }
 0x30d   :  { %1027 = vmatpush.bf16.msrb.mxu2 %v2230_v46  ;;  %1040 = vmatpush.bf16.msrb.mxu3 %v2233_v47 }
 0x36b   :  { %v749_v0 = vpop.f32.mrf.mxu0  ;;  %v762_v5 = vpop.f32.mrf.mxu1 }
 0x36c   :  { %v792_v15 = vadd.f32 %v1601_v32, %v749_v0  ;;  %v793_v6 = vadd.f32 %v1602_v1, %v762_v5 }
 0x36e   :  { %v1605_v14 = vmul.f32 -1.442695, %v792_v15  ;;  %v1606_v18 = vmul.f32 -1.442695, %v793_v6 }
 0x370   :  { %1805 = vpow2.f32 %v1605_v14 }
 0x371   :  { %1807 = vpow2.f32 %v1606_v18 }
 0x372   :  { %v775_v9 = vpop.f32.mrf.mxu2  ;;  %v788_v36 = vpop.f32.mrf.mxu3 }
 0x373   :  { %v795_v24 = vadd.f32 %v1604_v26, %v788_v36  ;;  %v751_v48 = vpop.f32.mrf.mxu0  ;;  %v764_v8 = vpop.f32.mrf.mxu1  ;;  %v794_v62 = vadd.f32 %v1603_v53, %v775_v9 }
 0x375   :  { %v1607_v25 = vmul.f32 -1.442695, %v795_v24 }
 0x376   :  { %v1806_v43 = vpop.eup %1805 }
 0x377   :  { %v1808_v37 = vpop.eup %1807  ;;  %v799_v19 = vadd.f32 1.0, %v1806_v43  ;;  %1809 = vpow2.f32 %v1607_v25 }
 0x378   :  { %v818_v33 = vadd.f32 1.0, %v1808_v37 }
 0x379   :  { %1811 = vrcp.f32 %v799_v19  ;;  %v811_v15 = vand.u32 2147483648, %v799_v19  ;;  %v809_v18 = vand.u32 2147483647, %v799_v19  ;;  %vm805_vm2 = vweird.f32 %v799_v19 }
 0x37a   :  { %1813 = vrcp.f32 %v818_v33  ;;  %v777_v45 = vpop.f32.mrf.mxu2  ;;  %v790_v57 = vpop.f32.mrf.mxu3  ;;  %v830_v6 = vand.u32 2147483648, %v818_v33  ;;  %v828_v36 = vand.u32 2147483647, %v818_v33  ;;  %vm824_vm3 = vweird.f32 %v818_v33 }
 0x37b   :  { %v812_v9 = vor.u32 1.1754944e-38, %v811_v15  ;;  %vm810_vm6 = vcmp.eq.f32.partialorder %v809_v18, 8.507059e+37 }
 0x37c   :  { %v831_v43 = vor.u32 1.1754944e-38, %v830_v6  ;;  %vm829_vm7 = vcmp.eq.f32.partialorder %v828_v36, 8.507059e+37 }
 0x37d   :  { %v1810_v58 = vpop.eup %1809 }
 0x37e   :  { %v838_v59 = vadd.f32 1.0, %v1810_v58 }
 0x37f   :  { %v1812_v55 = vpop.eup %1811 }
 0x380   :  { %v1814_v27 = vpop.eup %1813  ;;  %v801_v32 = vmul.f32 %v1812_v55, %v799_v19  ;;  %1815 = vrcp.f32 %v838_v59  ;;  %vm806_vm0 = vweird.f32 %v1812_v55  ;;  %vm844_vm9 = vweird.f32 %v838_v59 }
 0x381   :  { %v820_v1 = vmul.f32 %v1814_v27, %v818_v33  ;;  %1817 = vtanh.f32 %v794_v62  ;;  %vm825_vm1 = vweird.f32 %v1814_v27  ;;  %vm807_vm4 = vmor %vm805_vm2, %vm806_vm0 }
 0x382   :  { %v802_v0 = vsub.f32 1.0, %v801_v32  ;;  %vm826_vm5 = vmor %vm824_vm3, %vm825_vm1 }
 0x383   :  { %v821_v5 = vsub.f32 1.0, %v820_v1 }
 0x384   :  { %v803_v14 = vmul.f32 %v1812_v55, %v802_v0 }
 0x385   :  { %v822_v26 = vmul.f32 %v1814_v27, %v821_v5  ;;  %v850_v5 = vand.u32 2147483648, %v838_v59 }
 0x386   :  { %v1816_v24 = vpop.eup %1815  ;;  %v804_v48 = vadd.f32 %v1812_v55, %v803_v14 }
 0x387   :  { %v823_v8 = vadd.f32 %v1814_v27, %v822_v26  ;;  %v840_v25 = vmul.f32 %v1816_v24, %v838_v59  ;;  %v1818_v45 = vpop.eup %1817  ;;  %vm845_vm8 = vweird.f32 %v1816_v24  ;;  %v851_v6 = vor.u32 1.1754944e-38, %v850_v5 }
 0x388   :  { %v808_v37 = vsel %vm807_vm4, %v1812_v55, %v804_v48  ;;  %v848_v55 = vand.u32 2147483647, %v838_v59  ;;  %vm846_vm10 = vmor %vm844_vm9, %vm845_vm8 }
 0x389   :  { %v813_v57 = vsel %vm810_vm6, %v812_v9, %v808_v37  ;;  %v827_v53 = vsel %vm826_vm5, %v1814_v27, %v823_v8  ;;  %v841_v58 = vsub.f32 1.0, %v840_v25 }
 0x38a   :  { %v832_v62 = vsel %vm829_vm7, %v831_v43, %v827_v53  ;;  %v855_v32 = vmul.f32 %v1818_v45, %v813_v57  ;;  %vm849_vm11 = vcmp.eq.f32.partialorder %v848_v55, 8.507059e+37 }
 0x38b   :  { %v854_v1 = vmul.f32 %v832_v62, %v2452_v42  ;;  %v842_v0 = vmul.f32 %v1816_v24, %v841_v58 }
 0x38d   :  { %v2504_v19 = vadd.f32 %v855_v32, %v854_v1  ;;  %v843_v33 = vadd.f32 %v1816_v24, %v842_v0 }
 0x38f   :  { %1819 = vtanh.f32 %v2504_v19  ;;  %v847_v15 = vsel %vm846_vm10, %v1816_v24, %v843_v33 }
 0x390   :  { %v852_v14 = vsel %vm849_vm11, %v851_v6, %v847_v15 }
 0x395   :  { %v1820_v27 = vpop.eup %1819 }
 0x396   :  { %v2507_v18 = vmul.f32 %v1820_v27, %v852_v14 }
 0x398   :  { %v866_v42 = vpack.c.bf16 %v2507_v18, %v2507_v18 }
 0x39a   :  { %875 = vmatmul.bf16.vlgmr.msra.gmra.mxu0 %v866_v42  ;;  %888 = vmatmul.bf16.vlgmr.msra.gmra.mxu1 %v866_v42 }
 0x39b   :  { %901 = vmatmul.bf16.vlgmr.msra.gmra.mxu2 %v866_v42  ;;  %914 = vmatmul.bf16.vlgmr.msra.gmra.mxu3 %v866_v42 }
 0x39c   :  { %1121 = vmatpush.bf16.msra.mxu0 %v1923_v3  ;;  %1134 = vmatpush.bf16.msra.mxu1 %v1934_v7  ;;  %v1608_v3 = vld [vmem:[%s2806_s0 + $0xa0] sm:$0xff]  ;;  %v1609_v7 = vld [vmem:[%s2806_s0 + $0xa8] sm:$0xff] }
 0x39d   :  { %1147 = vmatpush.bf16.msra.mxu2 %v2081_v52  ;;  %1160 = vmatpush.bf16.msra.mxu3 %v2087_v54 }
 0x3a0   :  { %1122 = vmatpush.bf16.msra.mxu0 %v1943_v10  ;;  %1135 = vmatpush.bf16.msra.mxu1 %v1947_v11 }
 0x3a1   :  { %1148 = vmatpush.bf16.msra.mxu2 %v2107_v60  ;;  %1161 = vmatpush.bf16.msra.mxu3 %v2110_v61 }
 0x3a4   :  { %1123 = vmatpush.bf16.msra.mxu0 %v1963_v16  ;;  %1136 = vmatpush.bf16.msra.mxu1 %v1967_v17 }
 0x3a5   :  { %1149 = vmatpush.bf16.msra.mxu2 %v2130_v2  ;;  %1162 = vmatpush.bf16.msra.mxu3 %v2133_v4  ;;  %v1610_v4 = vld [vmem:[%s2806_s0 + $0xb0] sm:$0xff] }
 0x3a8   :  { %1124 = vmatpush.bf16.msra.mxu0 %v1983_v22  ;;  %1137 = vmatpush.bf16.msra.mxu1 %v1987_v23 }
 0x3a9   :  { %1150 = vmatpush.bf16.msra.mxu2 %v2150_v12  ;;  %1163 = vmatpush.bf16.msra.mxu3 %v2153_v13 }
 0x3ac   :  { %1125 = vmatpush.bf16.msra.mxu0 %v2003_v28  ;;  %1138 = vmatpush.bf16.msra.mxu1 %v2007_v29  ;;  %v1611_v28 = vld [vmem:[%s2806_s0 + $0xb8] sm:$0xff] }
 0x3ad   :  { %1151 = vmatpush.bf16.msra.mxu2 %v2170_v20  ;;  %1164 = vmatpush.bf16.msra.mxu3 %v2173_v21 }
 0x3b0   :  { %1126 = vmatpush.bf16.msra.mxu0 %v2023_v34  ;;  %1139 = vmatpush.bf16.msra.mxu1 %v2027_v35 }
 0x3b1   :  { %1152 = vmatpush.bf16.msra.mxu2 %v2190_v30  ;;  %1165 = vmatpush.bf16.msra.mxu3 %v2193_v31 }
 0x3b4   :  { %1127 = vmatpush.bf16.msra.mxu0 %v2043_v40  ;;  %1140 = vmatpush.bf16.msra.mxu1 %v2047_v41 }
 0x3b5   :  { %1153 = vmatpush.bf16.msra.mxu2 %v2210_v38  ;;  %1166 = vmatpush.bf16.msra.mxu3 %v2213_v39 }
 0x3b8   :  { %1128 = vmatpush.bf16.msra.mxu0 %v2075_v50  ;;  %1141 = vmatpush.bf16.msra.mxu1 %v2079_v51 }
 0x3b9   :  { %1154 = vmatpush.bf16.msra.mxu2 %v2230_v46  ;;  %1167 = vmatpush.bf16.msra.mxu3 %v2233_v47 }
 0x417   :  { %v876_v10 = vpop.f32.mrf.mxu0  ;;  %v889_v11 = vpop.f32.mrf.mxu1 }
 0x418   :  { %v919_v16 = vadd.f32 %v1608_v3, %v876_v10  ;;  %v920_v17 = vadd.f32 %v1609_v7, %v889_v11  ;;  %v1687_v11 = vld [vmem:[%s2808_s2 + $0x70] sm:$0xf] }
 0x41a   :  { %v1612_v22 = vmul.f32 -1.442695, %v919_v16  ;;  %v1613_v23 = vmul.f32 -1.442695, %v920_v17  ;;  %v1740_v16 = vld [vmem:[%s2808_s2 + $0x74] sm:$0xf0] }
 0x41b   :  { %v1739_v17 = vld [vmem:[%s2808_s2 + $0x74] sm:$0xf] }
 0x41c   :  { %1821 = vpow2.f32 %v1612_v22  ;;  %v1615_v22 = vld [vmem:[%s2806_s0 + $0xc0] sm:$0xff] }
 0x41d   :  { %1823 = vpow2.f32 %v1613_v23  ;;  %v1616_v23 = vld [vmem:[%s2806_s0 + $0xc8] sm:$0xff] }
 0x41e   :  { %v902_v29 = vpop.f32.mrf.mxu2  ;;  %v915_v34 = vpop.f32.mrf.mxu3 }
 0x41f   :  { %v922_v35 = vadd.f32 %v1611_v28, %v915_v34  ;;  %v878_v40 = vpop.f32.mrf.mxu0  ;;  %v891_v41 = vpop.f32.mrf.mxu1  ;;  %v921_v21 = vadd.f32 %v1610_v4, %v902_v29  ;;  %v1688_v28 = vor.u32 %v1740_v16, %v1687_v11  ;;  %v1689_v29 = vld [vmem:[%s2808_s2 + $0x78] sm:$0xf0]  ;;  %v1649_v11 = vld [vmem:[%s2808_s2 + $0x28] sm:$0xf0] }
 0x420   :  { %v1692_v34 = vor.u32 %v1739_v17, %v1689_v29 }
 0x421   :  { %v1614_v50 = vmul.f32 -1.442695, %v922_v35 }
 0x422   :  { %v1822_v51 = vpop.eup %1821 }
 0x423   :  { %v1824_v52 = vpop.eup %1823  ;;  %v926_v54 = vadd.f32 1.0, %v1822_v51  ;;  %1825 = vpow2.f32 %v1614_v50  ;;  %v1679_v51 = vld [vmem:[%s2808_s2 + $0x60] sm:$0xf] }
 0x424   :  { %v945_v60 = vadd.f32 1.0, %v1824_v52  ;;  %v1738_v52 = vld [vmem:[%s2808_s2 + $0x64] sm:$0xf0] }
 0x425   :  { %1827 = vrcp.f32 %v926_v54  ;;  %v938_v47 = vand.u32 2147483648, %v926_v54  ;;  %v936_v36 = vand.u32 2147483647, %v926_v54  ;;  %vm932_vm14 = vweird.f32 %v926_v54 }
 0x426   :  { %1829 = vrcp.f32 %v945_v60  ;;  %v904_v61 = vpop.f32.mrf.mxu2  ;;  %v917_v2 = vpop.f32.mrf.mxu3  ;;  %v957_v59 = vand.u32 2147483648, %v945_v60  ;;  %v955_v48 = vand.u32 2147483647, %v945_v60  ;;  %vm951_vm15 = vweird.f32 %v945_v60 }
 0x427   :  { %v939_v25 = vor.u32 1.1754944e-38, %v938_v47  ;;  %vm937_vm2 = vcmp.eq.f32.partialorder %v936_v36, 8.507059e+37  ;;  %v1681_v61 = vld [vmem:[%s2808_s2 + $0x68] sm:$0xf0] }
 0x428   :  { %v958_v45 = vor.u32 1.1754944e-38, %v957_v59  ;;  %vm956_vm3 = vcmp.eq.f32.partialorder %v955_v48, 8.507059e+37  ;;  %v1733_v59 = vld [vmem:[%s2808_s2 + $0x44] sm:$0xf] }
 0x429   :  { %v1826_v12 = vpop.eup %1825 }
 0x42a   :  { %v965_v13 = vadd.f32 1.0, %v1826_v12  ;;  %v1618_v12 = vld [vmem:[%s2806_s0 + $0xd8] sm:$0xff] }
 0x42b   :  { %v1828_v20 = vpop.eup %1827 }
 0x42c   :  { %v1830_v30 = vpop.eup %1829  ;;  %v928_v31 = vmul.f32 %v1828_v20, %v926_v54  ;;  %1831 = vrcp.f32 %v965_v13  ;;  %vm933_vm12 = vweird.f32 %v1828_v20  ;;  %v977_v6 = vand.u32 2147483648, %v965_v13  ;;  %v1737_v54 = vld [vmem:[%s2808_s2 + $0x64] sm:$0xf] }
 0x42d   :  { %v947_v38 = vmul.f32 %v1830_v30, %v945_v60  ;;  %1833 = vtanh.f32 %v921_v21  ;;  %vm952_vm13 = vweird.f32 %v1830_v30  ;;  %vm934_vm0 = vmor %vm932_vm14, %vm933_vm12  ;;  %vm971_vm5 = vweird.f32 %v965_v13  ;;  %v1736_v21 = vld [vmem:[%s2808_s2 + $0x54] sm:$0xf0] }
 0x42e   :  { %v929_v39 = vsub.f32 1.0, %v928_v31  ;;  %vm953_vm1 = vmor %vm951_vm15, %vm952_vm13  ;;  %v975_v27 = vand.u32 2147483647, %v965_v13  ;;  %v978_v42 = vor.u32 1.1754944e-38, %v977_v6  ;;  %v1680_v60 = vor.u32 %v1738_v52, %v1679_v51  ;;  %v1617_v6 = vld [vmem:[%s2806_s0 + $0xd0] sm:$0xff] }
 0x42f   :  { %v948_v46 = vsub.f32 1.0, %v947_v38  ;;  %v1673_v38 = vld [vmem:[%s2808_s2 + $0x58] sm:$0xf0] }
 0x430   :  { %v930_v26 = vmul.f32 %v1828_v20, %v929_v39  ;;  %vm976_vm7 = vcmp.eq.f32.partialorder %v975_v27, 8.507059e+37  ;;  %v1663_v39 = vld [vmem:[%s2808_s2 + $0x40] sm:$0xf] }
 0x431   :  { %v949_v24 = vmul.f32 %v1830_v30, %v948_v46  ;;  %v1734_v46 = vld [vmem:[%s2808_s2 + $0x44] sm:$0xf0] }
 0x432   :  { %v1832_v9 = vpop.eup %1831  ;;  %v931_v8 = vadd.f32 %v1828_v20, %v930_v26  ;;  %v1665_v26 = vld [vmem:[%s2808_s2 + $0x48] sm:$0xf0] }
 0x433   :  { %v950_v43 = vadd.f32 %v1830_v30, %v949_v24  ;;  %v967_v37 = vmul.f32 %v1832_v9, %v965_v13  ;;  %v1834_v53 = vpop.eup %1833  ;;  %vm972_vm4 = vweird.f32 %v1832_v9  ;;  %v1684_v13 = vor.u32 %v1737_v54, %v1681_v61  ;;  %v1726_v61 = vld [vmem:[%s2808_s2 + $0x4] sm:$0xf0] }
 0x434   :  { %v935_v57 = vsel %vm934_vm0, %v1828_v20, %v931_v8  ;;  %vm973_vm6 = vmor %vm971_vm5, %vm972_vm4  ;;  %v1671_v20 = vld [vmem:[%s2808_s2 + $0x50] sm:$0xf] }
 0x435   :  { %v940_v58 = vsel %vm937_vm2, %v939_v25, %v935_v57  ;;  %v954_v62 = vsel %vm953_vm1, %v1830_v30, %v950_v43  ;;  %v968_v32 = vsub.f32 1.0, %v967_v37  ;;  %v1735_v30 = vld [vmem:[%s2808_s2 + $0x54] sm:$0xf]  ;;  %v1672_v31 = vor.u32 %v1736_v21, %v1671_v20 }
 0x436   :  { %v959_v1 = vsel %vm956_vm3, %v958_v45, %v954_v62  ;;  %v982_v0 = vmul.f32 %v1834_v53, %v940_v58  ;;  %v1676_v47 = vor.u32 %v1735_v30, %v1673_v38  ;;  %v1664_v25 = vor.u32 %v1734_v46, %v1663_v39  ;;  %v1655_v62 = vld [vmem:[%s2808_s2 + $0x30] sm:$0xf] }
 0x437   :  { %v981_v33 = vmul.f32 %v959_v1, %v2504_v19  ;;  %v969_v5 = vmul.f32 %v1832_v9, %v968_v32  ;;  %v1668_v43 = vor.u32 %v1733_v59, %v1665_v26 }
 0x439   :  { %v2556_v55 = vadd.f32 %v982_v0, %v981_v33  ;;  %v970_v15 = vadd.f32 %v1832_v9, %v969_v5  ;;  %v1732_v0 = vld [vmem:[%s2808_s2 + $0x34] sm:$0xf0]  ;;  %v1731_v5 = vld [vmem:[%s2808_s2 + $0x34] sm:$0xf] }
 0x43a   :  { %v1656_v33 = vor.u32 %v1732_v0, %v1655_v62 }
 0x43b   :  { %1835 = vtanh.f32 %v2556_v55  ;;  %v974_v14 = vsel %vm973_vm6, %v1832_v9, %v970_v15  ;;  %v1657_v15 = vld [vmem:[%s2808_s2 + $0x38] sm:$0xf0] }
 0x43c   :  { %v979_v7 = vsel %vm976_vm7, %v978_v42, %v974_v14  ;;  %v1660_v27 = vor.u32 %v1731_v5, %v1657_v15  ;;  %v1647_v14 = vld [vmem:[%s2808_s2 + $0x20] sm:$0xf]  ;;  %v1730_v42 = vld [vmem:[%s2808_s2 + $0x24] sm:$0xf0] }
 0x441   :  { %v1836_v3 = vpop.eup %1835 }
 0x442   :  { %v2559_v10 = vmul.f32 %v1836_v3, %v979_v7  ;;  %v1648_v7 = vor.u32 %v1730_v42, %v1647_v14  ;;  %v1257_v14 = vpack.c.bf16 %v2351_v49, %v2299_v44  ;;  %v1258_v42 = vpack.c.bf16 %v2455_v63, %v2403_v56  ;;  %v1623_v44 = vld [vmem:[%s2806_s0 + $0xe8] sm:$0xff] }
 0x444   :  { %v993_v19 = vpack.c.bf16 %v2559_v10, %v2559_v10 }
 0x446   :  { %1002 = vmatmul.bf16.vlgmr.msrb.gmra.mxu0 %v993_v19  ;;  %1015 = vmatmul.bf16.vlgmr.msrb.gmra.mxu1 %v993_v19 }
 0x447   :  { %1028 = vmatmul.bf16.vlgmr.msrb.gmra.mxu2 %v993_v19  ;;  %1041 = vmatmul.bf16.vlgmr.msrb.gmra.mxu3 %v993_v19  ;;  %v1729_v19 = vld [vmem:[%s2808_s2 + $0x24] sm:$0xf] }
 0x448   :  { %1363 = vmatpush.bf16.msrb.mxu0 %v1688_v28  ;;  %1392 = vmatpush.bf16.msrb.mxu1 %v1692_v34  ;;  %v1652_v17 = vor.u32 %v1729_v19, %v1649_v11  ;;  %v1727_v34 = vld [vmem:[%s2808_s2 + $0x14] sm:$0xf] }
 0x44c   :  { %1364 = vmatpush.bf16.msrb.mxu0 %v1680_v60  ;;  %1393 = vmatpush.bf16.msrb.mxu1 %v1684_v13  ;;  %v1631_v60 = vld [vmem:[%s2808_s2] sm:$0xf]  ;;  %v1633_v13 = vld [vmem:[%s2808_s2 + $0x8] sm:$0xf0] }
 0x44d   :  { %v1632_v39 = vor.u32 %v1726_v61, %v1631_v60  ;;  %v1624_v61 = vld [vmem:[%s2806_s0 + $0xf0] sm:$0xff] }
 0x450   :  { %1365 = vmatpush.bf16.msrb.mxu0 %v1672_v31  ;;  %1394 = vmatpush.bf16.msrb.mxu1 %v1676_v47 }
 0x454   :  { %1366 = vmatpush.bf16.msrb.mxu0 %v1664_v25  ;;  %1395 = vmatpush.bf16.msrb.mxu1 %v1668_v43 }
 0x458   :  { %1367 = vmatpush.bf16.msrb.mxu0 %v1656_v33  ;;  %1396 = vmatpush.bf16.msrb.mxu1 %v1660_v27 }
 0x45c   :  { %1368 = vmatpush.bf16.msrb.mxu0 %v1648_v7  ;;  %1397 = vmatpush.bf16.msrb.mxu1 %v1652_v17  ;;  %v1622_v7 = vld [vmem:[%s2806_s0 + $0xe0] sm:$0xff] }
 0x4c3   :  { %v1003_v35 = vpop.f32.mrf.mxu0  ;;  %v1016_v40 = vpop.f32.mrf.mxu1 }
 0x4c4   :  { %v1046_v41 = vadd.f32 %v1615_v22, %v1003_v35  ;;  %v1047_v50 = vadd.f32 %v1616_v23, %v1016_v40  ;;  %v1639_v22 = vld [vmem:[%s2808_s2 + $0x10] sm:$0xf]  ;;  %v1728_v23 = vld [vmem:[%s2808_s2 + $0x14] sm:$0xf0]  ;;  %v1641_v35 = vld [vmem:[%s2808_s2 + $0x18] sm:$0xf0] }
 0x4c5   :  { %v1640_v51 = vor.u32 %v1728_v23, %v1639_v22  ;;  %v1644_v54 = vor.u32 %v1727_v34, %v1641_v35  ;;  %v1277_v34 = vld [vmem:[%s2809_s3] sm:$0x3] }
 0x4c6   :  { %v1619_v2 = vmul.f32 -1.442695, %v1046_v41  ;;  %v1620_v4 = vmul.f32 -1.442695, %v1047_v50 }
 0x4c7   :  { %1369 = vmatpush.bf16.msrb.mxu0 %v1640_v51  ;;  %1398 = vmatpush.bf16.msrb.mxu1 %v1644_v54  ;;  %v2718_v51 = vperm.slane %v1277_v34, 0 }
 0x4c8   :  { %1837 = vpow2.f32 %v1619_v2 }
 0x4c9   :  { %1839 = vpow2.f32 %v1620_v4 }
 0x4ca   :  { %v1029_v36 = vpop.f32.mrf.mxu2  ;;  %v1042_v24 = vpop.f32.mrf.mxu3 }
 0x4cb   :  { %v1049_v48 = vadd.f32 %v1618_v12, %v1042_v24  ;;  %v1005_v9 = vpop.f32.mrf.mxu0  ;;  %v1018_v8 = vpop.f32.mrf.mxu1  ;;  %v1048_v29 = vadd.f32 %v1617_v6, %v1029_v36  ;;  %v1725_v12 = vld [vmem:[%s2808_s2 + $0x4] sm:$0xf]  ;;  %1370 = vmatpush.bf16.msrb.mxu0 %v1632_v39 }
 0x4cc   :  { %v1636_v59 = vor.u32 %v1725_v12, %v1633_v13 }
 0x4cd   :  { %v1621_v37 = vmul.f32 -1.442695, %v1049_v48 }
 0x4ce   :  { %v1838_v45 = vpop.eup %1837  ;;  %1399 = vmatpush.bf16.msrb.mxu1 %v1636_v59 }
 0x4cf   :  { %v1840_v57 = vpop.eup %1839  ;;  %v2620_v53 = vadd.f32 1.0, %v1838_v45  ;;  %1841 = vpow2.f32 %v1621_v37 }
 0x4d0   :  { %v2622_v58 = vadd.f32 1.0, %v1840_v57 }
 0x4d1   :  { %1843 = vrcp.f32 %v2620_v53  ;;  %v1065_v4 = vand.u32 2147483648, %v2620_v53  ;;  %v1063_v30 = vand.u32 2147483647, %v2620_v53  ;;  %vm1059_vm10 = vweird.f32 %v2620_v53 }
 0x4d2   :  { %1845 = vrcp.f32 %v2622_v58  ;;  %v1031_v32 = vpop.f32.mrf.mxu2  ;;  %v1044_v1 = vpop.f32.mrf.mxu3  ;;  %v1084_v20 = vand.u32 2147483648, %v2622_v58  ;;  %v1082_v38 = vand.u32 2147483647, %v2622_v58  ;;  %vm1078_vm11 = vweird.f32 %v2622_v58 }
 0x4d3   :  { %v1066_v26 = vor.u32 1.1754944e-38, %v1065_v4  ;;  %vm1064_vm14 = vcmp.eq.f32.partialorder %v1063_v30, 8.507059e+37 }
 0x4d4   :  { %v1085_v48 = vor.u32 1.1754944e-38, %v1084_v20  ;;  %vm1083_vm15 = vcmp.eq.f32.partialorder %v1082_v38, 8.507059e+37 }
 0x4d5   :  { %v1842_v3 = vpop.eup %1841 }
 0x4d6   :  { %v2653_v16 = vadd.f32 1.0, %v1842_v3  ;;  %v1259_v3 = vpack.c.bf16 %v2559_v10, %v2507_v18  ;;  %v1625_v18 = vld [vmem:[%s2806_s0 + $0xf8] sm:$0xff] }
 0x4d7   :  { %v1844_v28 = vpop.eup %1843 }
 0x4d8   :  { %v1846_v40 = vpop.eup %1845  ;;  %v1055_v41 = vmul.f32 %v1844_v28, %v2620_v53  ;;  %1847 = vrcp.f32 %v2653_v16  ;;  %vm1060_vm8 = vweird.f32 %v1844_v28  ;;  %v1104_v1 = vand.u32 2147483648, %v2653_v16 }
 0x4d9   :  { %v1074_v50 = vmul.f32 %v1846_v40, %v2622_v58  ;;  %1849 = vtanh.f32 %v1048_v29  ;;  %vm1079_vm9 = vweird.f32 %v1846_v40  ;;  %vm1061_vm12 = vmor %vm1059_vm10, %vm1060_vm8  ;;  %vm1098_vm1 = vweird.f32 %v2653_v16 }
 0x4da   :  { %v1056_v52 = vsub.f32 1.0, %v1055_v41  ;;  %vm1080_vm13 = vmor %vm1078_vm11, %vm1079_vm9  ;;  %v1102_v0 = vand.u32 2147483647, %v2653_v16  ;;  %v1105_v5 = vor.u32 1.1754944e-38, %v1104_v1 }
 0x4db   :  { %v1075_v2 = vsub.f32 1.0, %v1074_v50 }
 0x4dc   :  { %v1057_v21 = vmul.f32 %v1844_v28, %v1056_v52  ;;  %vm1103_vm3 = vcmp.eq.f32.partialorder %v1102_v0, 8.507059e+37  ;;  %v2720_v52 = vperm.slane %v1277_v34, 1 }
 0x4dd   :  { %v1076_v31 = vmul.f32 %v1846_v40, %v1075_v2 }
 0x4de   :  { %v1848_v46 = vpop.eup %1847  ;;  %v1058_v47 = vadd.f32 %v1844_v28, %v1057_v21 }
 0x4df   :  { %v1077_v36 = vadd.f32 %v1846_v40, %v1076_v31  ;;  %v1094_v24 = vmul.f32 %v1848_v46, %v2653_v16  ;;  %v1850_v8 = vpop.eup %1849  ;;  %vm1099_vm0 = vweird.f32 %v1848_v46 }
 0x4e0   :  { %v1062_v9 = vsel %vm1061_vm12, %v1844_v28, %v1058_v47  ;;  %vm1100_vm2 = vmor %vm1098_vm1, %vm1099_vm0 }
 0x4e1   :  { %v1067_v25 = vsel %vm1064_vm14, %v1066_v26, %v1062_v9  ;;  %v1081_v43 = vsel %vm1080_vm13, %v1846_v40, %v1077_v36  ;;  %v1095_v37 = vsub.f32 1.0, %v1094_v24 }
 0x4e2   :  { %v1086_v45 = vsel %vm1083_vm15, %v1085_v48, %v1081_v43  ;;  %v1109_v57 = vmul.f32 %v1850_v8, %v1067_v25 }
 0x4e3   :  { %v1108_v53 = vmul.f32 %v1086_v45, %v2556_v55  ;;  %v1096_v58 = vmul.f32 %v1848_v46, %v1095_v37 }
 0x4e5   :  { %v2690_v62 = vadd.f32 %v1109_v57, %v1108_v53  ;;  %v1097_v32 = vadd.f32 %v1848_v46, %v1096_v58 }
 0x4e7   :  { %1851 = vtanh.f32 %v2690_v62  ;;  %v1101_v33 = vsel %vm1100_vm2, %v1848_v46, %v1097_v32 }
 0x4e8   :  { %v1106_v6 = vsel %vm1103_vm3, %v1105_v5, %v1101_v33 }
 0x4ed   :  { %v1852_v15 = vpop.eup %1851 }
 0x4ee   :  { %v2696_v55 = vmul.f32 %v1852_v15, %v1106_v6 }
 0x4f0   :  { %v1120_v27 = vpack.c.bf16 %v2696_v55, %v2696_v55 }
 0x4f2   :  { %1129 = vmatmul.bf16.vlgmr.msra.gmra.mxu0 %v1120_v27  ;;  %1142 = vmatmul.bf16.vlgmr.msra.gmra.mxu1 %v1120_v27 }
 0x4f3   :  { %1155 = vmatmul.bf16.vlgmr.msra.gmra.mxu2 %v1120_v27  ;;  %1168 = vmatmul.bf16.vlgmr.msra.gmra.mxu3 %v1120_v27 }
 0x502   :  { %1371 = vmatmul.bf16.vlgmr.msrb.gmra.mxu0 %v1257_v14  ;;  %1400 = vmatmul.bf16.vlgmr.msrb.gmra.mxu1 %v1257_v14 }
 0x512   :  { %1376 = vmatmul.bf16.gmra.mxu0 %v1258_v42  ;;  %1405 = vmatmul.bf16.gmra.mxu1 %v1258_v42 }
 0x522   :  { %1381 = vmatmul.bf16.gmra.mxu0 %v1259_v3  ;;  %1410 = vmatmul.bf16.gmra.mxu1 %v1259_v3 }
 0x56f   :  { %v1130_v49 = vpop.f32.mrf.mxu0  ;;  %v1143_v19 = vpop.f32.mrf.mxu1 }
 0x570   :  { %v1173_v11 = vadd.f32 %v1622_v7, %v1130_v49  ;;  %v1174_v16 = vadd.f32 %v1623_v44, %v1143_v19 }
 0x572   :  { %v1626_v56 = vmul.f32 -1.442695, %v1173_v11  ;;  %v1627_v63 = vmul.f32 -1.442695, %v1174_v16 }
 0x574   :  { %1853 = vpow2.f32 %v1626_v56 }
 0x575   :  { %1855 = vpow2.f32 %v1627_v63 }
 0x576   :  { %v1156_v10 = vpop.f32.mrf.mxu2  ;;  %v1169_v17 = vpop.f32.mrf.mxu3 }
 0x577   :  { %v1176_v22 = vadd.f32 %v1625_v18, %v1169_v17  ;;  %v1132_v23 = vpop.f32.mrf.mxu0  ;;  %v1145_v28 = vpop.f32.mrf.mxu1  ;;  %v1175_v21 = vadd.f32 %v1624_v61, %v1156_v10 }
 0x579   :  { %v1628_v29 = vmul.f32 -1.442695, %v1176_v22 }
 0x57a   :  { %v1854_v35 = vpop.eup %1853 }
 0x57b   :  { %v1856_v40 = vpop.eup %1855  ;;  %v1180_v41 = vadd.f32 1.0, %v1854_v35  ;;  %1857 = vpow2.f32 %v1628_v29 }
 0x57c   :  { %v1199_v50 = vadd.f32 1.0, %v1856_v40 }
 0x57d   :  { %1859 = vrcp.f32 %v1180_v41  ;;  %v1190_v36 = vand.u32 2147483647, %v1180_v41  ;;  %v1192_v24 = vand.u32 2147483648, %v1180_v41  ;;  %vm1186_vm6 = vweird.f32 %v1180_v41 }
 0x57e   :  { %1861 = vrcp.f32 %v1199_v50  ;;  %v1158_v54 = vpop.f32.mrf.mxu2  ;;  %v1171_v60 = vpop.f32.mrf.mxu3  ;;  %v1211_v26 = vand.u32 2147483648, %v1199_v50  ;;  %v1209_v45 = vand.u32 2147483647, %v1199_v50  ;;  %vm1205_vm7 = vweird.f32 %v1199_v50 }
 0x57f   :  { %v1372_v2 = vpop.f32.mrf.mxu0  ;;  %v1401_v4 = vpop.f32.mrf.mxu1  ;;  %v1193_v58 = vor.u32 1.1754944e-38, %v1192_v24  ;;  %vm1191_vm10 = vcmp.eq.f32.partialorder %v1190_v36, 8.507059e+37 }
 0x580   :  { %v1373_v12 = vadd.f32 %v1372_v2, %v2718_v51  ;;  %v1402_v13 = vadd.f32 %v1401_v4, %v2720_v52  ;;  %v1212_v33 = vor.u32 1.1754944e-38, %v1211_v26  ;;  %vm1210_vm11 = vcmp.eq.f32.partialorder %v1209_v45, 8.507059e+37 }
 0x581   :  { %v1858_v20 = vpop.eup %1857 }
 0x582   :  { %v2727_v30 = vadd.f32 1.0, %v1858_v20  ;;  %1421 = vst [vmem:[%s2810_s6] sm:$0xff] %v1373_v12 }
 0x583   :  { %v1860_v31 = vpop.eup %1859  ;;  %1422 = vst [vmem:[%s2810_s6 + $0x8] sm:$0xff] %v1402_v13 }
 0x584   :  { %v1862_v38 = vpop.eup %1861  ;;  %v1182_v39 = vmul.f32 %v1860_v31, %v1180_v41  ;;  %1863 = vrcp.f32 %v2727_v30  ;;  %vm1187_vm4 = vweird.f32 %v1860_v31  ;;  %vm1225_vm13 = vweird.f32 %v2727_v30 }
 0x585   :  { %v1201_v46 = vmul.f32 %v1862_v38, %v1199_v50  ;;  %1865 = vtanh.f32 %v1175_v21  ;;  %vm1206_vm5 = vweird.f32 %v1862_v38  ;;  %vm1188_vm8 = vmor %vm1186_vm6, %vm1187_vm4  ;;  %v1229_v63 = vand.u32 2147483647, %v2727_v30 }
 0x586   :  { %v1183_v47 = vsub.f32 1.0, %v1182_v39  ;;  %vm1207_vm9 = vmor %vm1205_vm7, %vm1206_vm5 }
 0x587   :  { %v1202_v59 = vsub.f32 1.0, %v1201_v46  ;;  %v1374_v48 = vpop.f32.mrf.mxu0  ;;  %v1403_v9 = vpop.f32.mrf.mxu1  ;;  %vm1230_vm15 = vcmp.eq.f32.partialorder %v1229_v63, 8.507059e+37 }
 0x588   :  { %v1184_v8 = vmul.f32 %v1860_v31, %v1183_v47  ;;  %v1375_v25 = vadd.f32 %v1374_v48, %v2718_v51  ;;  %v1404_v43 = vadd.f32 %v1403_v9, %v2720_v52 }
 0x589   :  { %v1203_v37 = vmul.f32 %v1862_v38, %v1202_v59 }
 0x58a   :  { %v1864_v57 = vpop.eup %1863  ;;  %v1185_v53 = vadd.f32 %v1860_v31, %v1184_v8  ;;  %1423 = vst [vmem:[%s2810_s6 + $0x10] sm:$0xff] %v1375_v25 }
 0x58b   :  { %v1204_v32 = vadd.f32 %v1862_v38, %v1203_v37  ;;  %1424 = vst [vmem:[%s2810_s6 + $0x18] sm:$0xff] %v1404_v43  ;;  %v1221_v1 = vmul.f32 %v1864_v57, %v2727_v30  ;;  %v1866_v0 = vpop.eup %1865  ;;  %vm1226_vm12 = vweird.f32 %v1864_v57 }
 0x58c   :  { %v1189_v5 = vsel %vm1188_vm8, %v1860_v31, %v1185_v53  ;;  %vm1227_vm14 = vmor %vm1225_vm13, %vm1226_vm12 }
 0x58d   :  { %v1194_v15 = vsel %vm1191_vm10, %v1193_v58, %v1189_v5  ;;  %v1208_v6 = vsel %vm1207_vm9, %v1862_v38, %v1204_v32  ;;  %v1222_v27 = vsub.f32 1.0, %v1221_v1 }
 0x58e   :  { %v1213_v14 = vsel %vm1210_vm11, %v1212_v33, %v1208_v6  ;;  %v1236_v42 = vmul.f32 %v1866_v0, %v1194_v15 }
 0x58f   :  { %v1235_v3 = vmul.f32 %v1213_v14, %v2690_v62  ;;  %v1377_v7 = vpop.f32.mrf.mxu0  ;;  %v1406_v44 = vpop.f32.mrf.mxu1  ;;  %v1223_v49 = vmul.f32 %v1864_v57, %v1222_v27  ;;  %v1231_v62 = vand.u32 2147483648, %v2727_v30 }
 0x590   :  { %v1378_v19 = vadd.f32 %v1377_v7, %v2718_v51  ;;  %v1407_v11 = vadd.f32 %v1406_v44, %v2720_v52 }
 0x591   :  { %v1237_v16 = vadd.f32 %v1236_v42, %v1235_v3  ;;  %v1224_v56 = vadd.f32 %v1864_v57, %v1223_v49  ;;  %v1232_v22 = vor.u32 1.1754944e-38, %v1231_v62 }
 0x592   :  { %1425 = vst [vmem:[%s2810_s6 + $0x20] sm:$0xff] %v1378_v19 }
 0x593   :  { %1246 = vst [vmem:[%s2811_s8] sm:$0xff] %v1237_v16  ;;  %1867 = vtanh.f32 %v1237_v16  ;;  %v1228_v18 = vsel %vm1227_vm14, %v1864_v57, %v1224_v56 }
 0x594   :  { %1426 = vst [vmem:[%s2810_s6 + $0x28] sm:$0xff] %v1407_v11  ;;  %v1233_v34 = vsel %vm1230_vm15, %v1232_v22, %v1228_v18 }
 0x597   :  { %v1379_v10 = vpop.f32.mrf.mxu0  ;;  %v1408_v17 = vpop.f32.mrf.mxu1 }
 0x598   :  { %v1380_v23 = vadd.f32 %v1379_v10, %v2718_v51  ;;  %v1409_v28 = vadd.f32 %v1408_v17, %v2720_v52 }
 0x599   :  { %v1868_v29 = vpop.eup %1867 }
 0x59a   :  { %1427 = vst [vmem:[%s2810_s6 + $0x30] sm:$0xff] %v1380_v23  ;;  %v1239_v35 = vmul.f32 %v1868_v29, %v1233_v34 }
 0x59b   :  { %1428 = vst [vmem:[%s2810_s6 + $0x38] sm:$0xff] %v1409_v28 }
 0x59c   :  { %1245 = vst [vmem:[%s2812_s7] sm:$0xff] %v1239_v35  ;;  %v1260_v40 = vpack.c.bf16 %v1239_v35, %v2696_v55 }
 0x59e   :  { %1386 = vmatmul.bf16.gmra.mxu0 %v1260_v40  ;;  %1415 = vmatmul.bf16.gmra.mxu1 %v1260_v40 }
 0x59f   :  { %v1382_v41 = vpop.f32.mrf.mxu0  ;;  %v1411_v50 = vpop.f32.mrf.mxu1 }
 0x5a0   :  { %v1383_v54 = vadd.f32 %v1382_v41, %v2718_v51  ;;  %v1412_v60 = vadd.f32 %v1411_v50, %v2720_v52 }
 0x5a2   :  { %1429 = vst [vmem:[%s2810_s6 + $0x40] sm:$0xff] %v1383_v54 }
 0x5a3   :  { %1430 = vst [vmem:[%s2810_s6 + $0x48] sm:$0xff] %v1412_v60 }
 0x5a7   :  { %v1384_v61 = vpop.f32.mrf.mxu0  ;;  %v1413_v2 = vpop.f32.mrf.mxu1 }
 0x5a8   :  { %v1385_v55 = vadd.f32 %v1384_v61, %v2718_v51  ;;  %v1414_v4 = vadd.f32 %v1413_v2, %v2720_v52 }
 0x5aa   :  { %1431 = vst [vmem:[%s2810_s6 + $0x50] sm:$0xff] %v1385_v55 }
 0x5ab   :  { %1432 = vst [vmem:[%s2810_s6 + $0x58] sm:$0xff] %v1414_v4 }
 0x61b   :  { %v1387_v12 = vpop.f32.mrf.mxu0  ;;  %v1416_v13 = vpop.f32.mrf.mxu1 }
 0x61c   :  { %v1388_v20 = vadd.f32 %v1387_v12, %v2718_v51  ;;  %v1417_v21 = vadd.f32 %v1416_v13, %v2720_v52 }
 0x61e   :  { %1433 = vst [vmem:[%s2810_s6 + $0x60] sm:$0xff] %v1388_v20 }
 0x61f   :  { %1434 = vst [vmem:[%s2810_s6 + $0x68] sm:$0xff] %v1417_v21 }
 0x623   :  { %v1389_v30 = vpop.f32.mrf.mxu0  ;;  %v1418_v31 = vpop.f32.mrf.mxu1 }
 0x624   :  { %v1390_v38 = vadd.f32 %v1389_v30, %v2718_v51  ;;  %v1419_v39 = vadd.f32 %v1418_v31, %v2720_v52 }
 0x626   :  { %1435 = vst [vmem:[%s2810_s6 + $0x70] sm:$0xff] %v1390_v38 }
 0x627   :  { %1436 = vst [vmem:[%s2810_s6 + $0x78] sm:$0xff] %v1419_v39 }

</bundles_post_ra>
